<compile_context>
chip_gen: v5e
topology: v5e:2x2
jax: 0.10.0
libtpu: 0.0.40
codegen_flags: <defaults>
</compile_context>

<pallas_src>
import functools
import math

import jax
import jax.numpy as jnp
from jax.experimental import pallas as pl
from jax.experimental.pallas import tpu as pltpu


def _round_up(x, m):
    return ((x + m - 1) // m) * m


# ---------------------------------------------------------------------------
# Fused kernel: conv1 -> conv2 -> conv3 -> GAP -> Linear, one batch tile/step.
# ---------------------------------------------------------------------------
def fcnn_fused_kernel(ks, x_ref, w1_ref, b1_ref, w2_ref, b2_ref, w3_ref,
                      b3_ref, fcw_ref, fcb_ref, o_ref, a0_ref, a1_ref, a2_ref):
    # ks     : static (K1, K2, K3) conv kernel sizes (bound via partial)
    # x_ref  : (Nb, L, Ci)             bf16 input tile, channels-last (NLC)
    # wX_ref : (K*Cin, Cout)           bf16 im2col conv weights (BN folded)
    # bX_ref : (1, Cout)               f32 folded BN bias
    # fcw_ref: (C3, c_out)             bf16 FC weight with GAP's 1/L folded in
    # fcb_ref: (1, c_out)              f32 FC bias
    # o_ref  : (Nb, 1, c_out)          f32 output tile
    # aX_ref : (Nb, padl+L+pad, Cin)   bf16 zero-padded activation scratch
    K1, K2, K3 = ks
    Nb, L, Ci = x_ref.shape
    M = Nb * L

    def stage(a_ref, val, K):
        # Write `val` (Nb, L, C) into the 'same'-padded scratch.  The left
        # halo is rounded up to an even row count so the packed-bf16 interior
        # store starts on a 32-bit sublane-word boundary.  Halo zeroing is
        # unconditional (cheap): correctness must not depend on which grid
        # step a TensorCore executes first under "parallel" megacore sharding.
        pad = K // 2
        padl = _round_up(pad, 2)
        Lp, C = a_ref.shape[1], a_ref.shape[2]
        if padl > 0:
            a_ref[:, :padl, :] = jnp.zeros((Nb, padl, C), a_ref.dtype)
        if Lp - padl - L > 0:
            a_ref[:, padl + L:, :] = jnp.zeros((Nb, Lp - padl - L, C),
                                               a_ref.dtype)
        a_ref[:, padl:padl + L, :] = val.astype(a_ref.dtype)

    def conv_block(a_ref, w_ref, b_ref, K):
        # Conv1d('same', stride 1, no bias) + folded-BN bias + ReLU.
        Cin = a_ref.shape[2]
        Co = w_ref.shape[-1]
        pad = K // 2
        off0 = _round_up(pad, 2) - pad                 # first tap's row offset
        if Cin % 128 == 0:
            # One im2col contraction: K shifted slices concatenated on the
            # lane-aligned channel axis -> (M, K*Cin) bf16 LHS, a single deep
            # MXU matmul with f32 accumulation (no per-tap f32 VALU adds).
            cols = [a_ref[:, off0 + k:off0 + k + L, :] for k in range(K)]
            lhs = jnp.concatenate(cols, axis=-1).reshape(M, K * Cin)
            acc = jnp.dot(lhs, w_ref[...], preferred_element_type=jnp.float32)
        else:
            # First layer: Cin (= c_in) is tiny and not lane-aligned, so an
            # im2col lane concat would be unaligned sub-tile shuffling; the
            # per-tap depth-Cin dots are negligible compute here.
            acc = jnp.zeros((M, Co), jnp.float32)
            for k in range(K):                         # static unroll
                lhs = a_ref[:, off0 + k:off0 + k + L, :].reshape(M, Cin)
                acc += jnp.dot(lhs, w_ref[k * Cin:(k + 1) * Cin, :],
                               preferred_element_type=jnp.float32)
        return jnp.maximum(acc + b_ref[...], 0.0)      # (M, Co) f32

    C1 = w1_ref.shape[-1]
    C2 = w2_ref.shape[-1]
    C3 = w3_ref.shape[-1]

    stage(a0_ref, x_ref[...], K1)
    y = conv_block(a0_ref, w1_ref, b1_ref, K1)
    stage(a1_ref, y.reshape(Nb, L, C1), K2)
    y = conv_block(a1_ref, w2_ref, b2_ref, K2)
    stage(a2_ref, y.reshape(Nb, L, C2), K3)
    y = conv_block(a2_ref, w3_ref, b3_ref, K3)

    # GAP1d (mean over time; 1/L folded into fcw) + Linear on the bf16 MXU —
    # the conv3 output never leaves VMEM.
    pooled = jnp.sum(y.reshape(Nb, L, C3), axis=1)     # (Nb, C3) f32 sums
    out = jnp.dot(pooled.astype(jnp.bfloat16), fcw_ref[...],
                  preferred_element_type=jnp.float32) + fcb_ref[...]
    o_ref[:, 0, :] = out.astype(o_ref.dtype)


# ---------------------------------------------------------------------------
# Wrapper
# ---------------------------------------------------------------------------
def _bytes(shape, dtype):
    return math.prod(shape) * jnp.dtype(dtype).itemsize


def _vmem_budget_bytes():
    # Generation-aware cap: ~3/4 of physical VMEM (128 MiB on v5e/v6e,
    # 64 MiB on v7x); conservative 64 MiB assumption if the query fails.
    try:
        cap = int(pltpu.get_tpu_info().vmem_capacity_bytes)
    except Exception:
        cap = 64 * 2 ** 20
    return (cap * 3) // 4


def _pick_batch_tile(n, l, est_fn, budget, target_rows=2048):
    # Largest divisor of n giving ~target_rows MXU rows per grid step while
    # the estimated working set stays inside the VMEM budget; keep the grid
    # length >= 2 when possible so the batch axis can shard across both v7x
    # TensorCores.
    best = 1
    for nb in range(1, n + 1):
        if n % nb:
            continue
        if nb * l > max(target_rows, l):
            continue
        if n >= 2 and n // nb < 2:
            continue
        if 2 * est_fn(nb) > budget:
            continue
        best = nb
    return best


def fcnn_forward(x_ncl, conv_params, fc_w, fc_b, *, batch_tile=None):
    """x_ncl: (N, c_in, L) f32 in PyTorch NCL layout.
    conv_params: 3 x (w (K, Cin, Cout) f32 with BN scale folded in,
                      bias (1, Cout) f32).
    fc_w: (C3, c_out) f32, fc_b: (c_out,) f32."""
    N, Ci, L = x_ncl.shape
    (w1, b1), (w2, b2), (w3, b3) = conv_params
    K1, K2, K3 = w1.shape[0], w2.shape[0], w3.shape[0]
    C1, C2, C3 = w1.shape[-1], w2.shape[-1], w3.shape[-1]
    c_out = fc_w.shape[-1]

    # Single wrapper-side relayout (NCL -> NLC, channels on lanes) fused with
    # the bf16 cast: half-size copy, and the per-step input DMA is halved too.
    x = jnp.transpose(x_ncl, (0, 2, 1)).astype(jnp.bfloat16)

    # im2col weight layout (K, Cin, Cout) -> (K*Cin, Cout), bf16 for the MXU.
    w1m = w1.reshape(K1 * Ci, C1).astype(jnp.bfloat16)
    w2m = w2.reshape(K2 * C1, C2).astype(jnp.bfloat16)
    w3m = w3.reshape(K3 * C2, C3).astype(jnp.bfloat16)
    b1 = b1.reshape(1, C1).astype(jnp.float32)
    b2 = b2.reshape(1, C2).astype(jnp.float32)
    b3 = b3.reshape(1, C3).astype(jnp.float32)
    # GAP's 1/L folded into the FC weight; bf16 for the MXU.
    fcw = (fc_w * (1.0 / L)).astype(jnp.bfloat16)
    fcb = fc_b.reshape(1, c_out).astype(jnp.float32)

    # Scratch time extents: even-aligned left halo + L + right halo.
    lp1 = _round_up(K1 // 2, 2) + L + K1 // 2
    lp2 = _round_up(K2 // 2, 2) + L + K2 // 2
    lp3 = _round_up(K3 // 2, 2) + L + K3 // 2

    w_bytes = sum(_bytes(a.shape, a.dtype)
                  for a in (w1m, w2m, w3m, fcw, b1, b2, b3, fcb))

    def est_vmem(nb):
        m = nb * L
        return (2 * _bytes((nb, L, Ci), jnp.bfloat16)            # input x2
                + 2 * _bytes((nb, 1, c_out), jnp.float32)        # output x2
                + w_bytes                                        # resident
                + _bytes((nb, lp1, Ci), jnp.bfloat16)            # scratch
                + _bytes((nb, lp2, C1), jnp.bfloat16)
                + _bytes((nb, lp3, C2), jnp.bfloat16)
                + _bytes((m, max(K2 * C1, K3 * C2)), jnp.bfloat16)  # im2col LHS
                + 2 * _bytes((m, max(C1, C2, C3)), jnp.float32))    # f32 acc

    budget = _vmem_budget_bytes()
    Nb = batch_tile if batch_tile is not None else _pick_batch_tile(
        N, L, est_vmem, budget)
    assert N % Nb == 0
    grid = (N // Nb,)
    vmem_limit = int(min(budget, max(2 * est_vmem(Nb), 32 * 2 ** 20)))

    out = pl.pallas_call(
        functools.partial(fcnn_fused_kernel, (K1, K2, K3)),
        out_shape=jax.ShapeDtypeStruct((N, 1, c_out), jnp.float32),
        grid=grid,
        in_specs=[
            pl.BlockSpec((Nb, L, Ci), lambda n: (n, 0, 0)),
            pl.BlockSpec((K1 * Ci, C1), lambda n: (0, 0)),
            pl.BlockSpec((1, C1), lambda n: (0, 0)),
            pl.BlockSpec((K2 * C1, C2), lambda n: (0, 0)),
            pl.BlockSpec((1, C2), lambda n: (0, 0)),
            pl.BlockSpec((K3 * C2, C3), lambda n: (0, 0)),
            pl.BlockSpec((1, C3), lambda n: (0, 0)),
            pl.BlockSpec((C3, c_out), lambda n: (0, 0)),
            pl.BlockSpec((1, c_out), lambda n: (0, 0)),
        ],
        out_specs=pl.BlockSpec((Nb, 1, c_out), lambda n: (n, 0, 0)),
        scratch_shapes=[
            pltpu.VMEM((Nb, lp1, Ci), jnp.bfloat16),
            pltpu.VMEM((Nb, lp2, C1), jnp.bfloat16),
            pltpu.VMEM((Nb, lp3, C2), jnp.bfloat16),
        ],
        compiler_params=pltpu.CompilerParams(
            dimension_semantics=("parallel",),
            vmem_limit_bytes=vmem_limit,
        ),
    )(x, w1m, b1, w2m, b2, w3m, b3, fcw, fcb)
    return out.reshape(N, c_out)


# ---------------------------------------------------------------------------
# Pure-JAX f32 reference (for a loose numerical check of the bf16 kernel).
# ---------------------------------------------------------------------------
def fcnn_reference(x_ncl, ref_conv_params, fc_w, fc_b):
    x = jnp.transpose(x_ncl, (0, 2, 1))               # (N, L, C) f32
    for (w_t, scale, bias) in ref_conv_params:        # w_t: (K, Cin, Cout) f32
        K = w_t.shape[0]
        pad = K // 2
        L = x.shape[1]
        xp = jnp.pad(x, ((0, 0), (pad, pad), (0, 0)))
        acc = 0.0
        for k in range(K):
            acc = acc + jnp.einsum('nlc,co->nlo', xp[:, k:k + L, :], w_t[k])
        x = jnp.maximum(acc * scale + bias, 0.0)
    pooled = x.mean(axis=1)
    return pooled @ fc_w + fc_b


if __name__ == "__main__":
    key = jax.random.PRNGKey(0)
    keys = jax.random.split(key, 20)

    # Small shapes consistent with the module.
    N, c_in, L, c_out = 2, 4, 16, 8
    layers = [128, 256, 128]
    kss = [7, 5, 3]
    eps = 1e-5

    kernel_params = []   # (folded f32 weight (K,Ci,Co), f32 bias (1,Co))
    ref_params = []      # (f32 weight (K,Ci,Co), scale (Co,), bias (Co,))
    ki = 1
    cin = c_in
    for nf, ks in zip(layers, kss):
        w = jax.random.normal(keys[ki], (nf, cin, ks), jnp.float32) * 0.1
        ki += 1
        gamma = 1.0 + 0.1 * jax.random.normal(keys[ki], (nf,), jnp.float32)
        ki += 1
        beta = 0.1 * jax.random.normal(keys[ki], (nf,), jnp.float32)
        ki += 1
        rmean = 0.1 * jax.random.normal(keys[ki], (nf,), jnp.float32)
        ki += 1
        rvar = 1.0 + 0.1 * jnp.abs(
            jax.random.normal(keys[ki], (nf,), jnp.float32))
        ki += 1
        scale = gamma / jnp.sqrt(rvar + eps)          # folded BN (inference)
        bias = beta - rmean * scale
        # torch Conv1d weight (Co, Ci, K) -> (K, Ci, Co); fold BN scale into W.
        w_t = jnp.transpose(w, (2, 1, 0))
        kernel_params.append((w_t * scale[None, None, :],
                              bias.reshape(1, nf).astype(jnp.float32)))
        ref_params.append((w_t, scale, bias))
        cin = nf

    # nn.Linear(layers[-1], c_out): weight (c_out, 128) -> (128, c_out)
    fc_w_torch = jax.random.normal(keys[ki], (c_out, layers[-1]),
                                   jnp.float32) * 0.1
    ki += 1
    fc_b = 0.1 * jax.random.normal(keys[ki], (c_out,), jnp.float32)
    fc_w = jnp.transpose(fc_w_torch)

    # Deterministic input in PyTorch NCL layout.
    x_ncl = jax.random.normal(keys[0], (N, c_in, L), jnp.float32)

    out = jax.block_until_ready(fcnn_forward(x_ncl, kernel_params, fc_w, fc_b))
    assert out.shape == (N, c_out), out.shape

    # Loose check vs f32 reference (expected ~1e-2-level error from bf16
    # weights / activations / input cast; this is not a bug).
    ref = jax.block_until_ready(fcnn_reference(x_ncl, ref_params, fc_w, fc_b))
    assert jnp.allclose(out, ref, rtol=1e-1, atol=1e-1), \
        float(jnp.max(jnp.abs(out - ref)))

    print("KERNEL_OK")
</pallas_src>

<mosaic_0001>
module attributes {stable_mosaic.version = 11 : i64} {
  func.func @fcnn_fused_kernel(%arg0: i32, %arg1: memref<1x16x4xbf16, #tpu.memory_space<vmem>>, %arg2: memref<28x128xbf16, #tpu.memory_space<vmem>>, %arg3: memref<1x128xf32, #tpu.memory_space<vmem>>, %arg4: memref<640x256xbf16, #tpu.memory_space<vmem>>, %arg5: memref<1x256xf32, #tpu.memory_space<vmem>>, %arg6: memref<768x128xbf16, #tpu.memory_space<vmem>>, %arg7: memref<1x128xf32, #tpu.memory_space<vmem>>, %arg8: memref<128x8xbf16, #tpu.memory_space<vmem>>, %arg9: memref<1x8xf32, #tpu.memory_space<vmem>>, %arg10: memref<1x1x8xf32, #tpu.memory_space<vmem>>, %arg11: memref<1x23x4xbf16, #tpu.memory_space<vmem>>, %arg12: memref<1x20x128xbf16, #tpu.memory_space<vmem>>, %arg13: memref<1x19x256xbf16, #tpu.memory_space<vmem>>) attributes {dimension_semantics = [#tpu.dimension_semantics<parallel>], iteration_bounds = array<i64: 2>, scalar_prefetch = 0 : i64, scratch_operands = 3 : i64, tpu.core_type = #tpu.core_type<tc>, window_params = [{transform_indices = @transform_0, window_bounds = array<i64: 1, 16, 4>}, {pipeline_mode = #tpu.pipeline_mode<synchronous>, transform_indices = @transform_1, window_bounds = array<i64: 28, 128>}, {pipeline_mode = #tpu.pipeline_mode<synchronous>, transform_indices = @transform_2, window_bounds = array<i64: 1, 128>}, {pipeline_mode = #tpu.pipeline_mode<synchronous>, transform_indices = @transform_3, window_bounds = array<i64: 640, 256>}, {pipeline_mode = #tpu.pipeline_mode<synchronous>, transform_indices = @transform_4, window_bounds = array<i64: 1, 256>}, {pipeline_mode = #tpu.pipeline_mode<synchronous>, transform_indices = @transform_5, window_bounds = array<i64: 768, 128>}, {pipeline_mode = #tpu.pipeline_mode<synchronous>, transform_indices = @transform_6, window_bounds = array<i64: 1, 128>}, {pipeline_mode = #tpu.pipeline_mode<synchronous>, transform_indices = @transform_7, window_bounds = array<i64: 128, 8>}, {pipeline_mode = #tpu.pipeline_mode<synchronous>, transform_indices = @transform_8, window_bounds = array<i64: 1, 8>}, {transform_indices = @transform_9, window_bounds = array<i64: 1, 1, 8>}]} {
    %c0 = arith.constant 0 : index
    %c0_0 = arith.constant 0 : index
    %c0_1 = arith.constant 0 : index
    %0 = vector.load %arg1[%c0, %c0_0, %c0_1] : memref<1x16x4xbf16, #tpu.memory_space<vmem>>, vector<1x16x4xbf16>
    %cst = arith.constant 0.000000e+00 : bf16
    %1 = vector.broadcast %cst : bf16 to vector<1x4x4xbf16>
    %c0_2 = arith.constant 0 : index
    %c0_3 = arith.constant 0 : index
    %c0_4 = arith.constant 0 : index
    %2 = vector.load %arg11[%c0_2, %c0_3, %c0_4] : memref<1x23x4xbf16, #tpu.memory_space<vmem>>, vector<1x4x4xbf16>
    tpu.vector_store %arg11[%c0_2, %c0_3, %c0_4], %1 {strides = array<i32>} : memref<1x23x4xbf16, #tpu.memory_space<vmem>>, vector<1x4x4xbf16>,
    %cst_5 = arith.constant 0.000000e+00 : bf16
    %3 = vector.broadcast %cst_5 : bf16 to vector<1x3x4xbf16>
    %c0_6 = arith.constant 0 : index
    %c20 = arith.constant 20 : index
    %c0_7 = arith.constant 0 : index
    %4 = vector.load %arg11[%c0_6, %c20, %c0_7] : memref<1x23x4xbf16, #tpu.memory_space<vmem>>, vector<1x3x4xbf16>
    tpu.vector_store %arg11[%c0_6, %c20, %c0_7], %3 {strides = array<i32>} : memref<1x23x4xbf16, #tpu.memory_space<vmem>>, vector<1x3x4xbf16>,
    %c0_8 = arith.constant 0 : index
    %c4 = arith.constant 4 : index
    %c0_9 = arith.constant 0 : index
    %5 = vector.load %arg11[%c0_8, %c4, %c0_9] : memref<1x23x4xbf16, #tpu.memory_space<vmem>>, vector<1x16x4xbf16>
    tpu.vector_store %arg11[%c0_8, %c4, %c0_9], %0 {strides = array<i32>} : memref<1x23x4xbf16, #tpu.memory_space<vmem>>, vector<1x16x4xbf16>,
    %cst_10 = arith.constant 0.000000e+00 : f32
    %6 = vector.broadcast %cst_10 : f32 to vector<16x128xf32>
    %c0_11 = arith.constant 0 : index
    %c1 = arith.constant 1 : index
    %c0_12 = arith.constant 0 : index
    %7 = vector.load %arg11[%c0_11, %c1, %c0_12] : memref<1x23x4xbf16, #tpu.memory_space<vmem>>, vector<1x16x4xbf16>
    %8 = vector.shape_cast %7 : vector<1x16x4xbf16> to vector<16x4xbf16>
    %c0_13 = arith.constant 0 : index
    %c0_14 = arith.constant 0 : index
    %9 = vector.load %arg2[%c0_13, %c0_14] : memref<28x128xbf16, #tpu.memory_space<vmem>>, vector<4x128xbf16>
    %cst_15 = arith.constant dense<0.000000e+00> : vector<16x128xf32>
    %10 = tpu.matmul %8, %9, %cst_15 {dimension_numbers = #tpu.dot_dimension_numbers<[1], [0], [0], [1], [0, 0, 1, 1], [], []>} : vector<16x4xbf16>, vector<4x128xbf16>, vector<16x128xf32> -> vector<16x128xf32>
    %11 = arith.addf %6, %10 : vector<16x128xf32>
    %c0_16 = arith.constant 0 : index
    %c2 = arith.constant 2 : index
    %c0_17 = arith.constant 0 : index
    %12 = vector.load %arg11[%c0_16, %c2, %c0_17] : memref<1x23x4xbf16, #tpu.memory_space<vmem>>, vector<1x16x4xbf16>
    %13 = vector.shape_cast %12 : vector<1x16x4xbf16> to vector<16x4xbf16>
    %c4_18 = arith.constant 4 : index
    %c0_19 = arith.constant 0 : index
    %14 = vector.load %arg2[%c4_18, %c0_19] : memref<28x128xbf16, #tpu.memory_space<vmem>>, vector<4x128xbf16>
    %cst_20 = arith.constant dense<0.000000e+00> : vector<16x128xf32>
    %15 = tpu.matmul %13, %14, %cst_20 {dimension_numbers = #tpu.dot_dimension_numbers<[1], [0], [0], [1], [0, 0, 1, 1], [], []>} : vector<16x4xbf16>, vector<4x128xbf16>, vector<16x128xf32> -> vector<16x128xf32>
    %16 = arith.addf %11, %15 : vector<16x128xf32>
    %c0_21 = arith.constant 0 : index
    %c3 = arith.constant 3 : index
    %c0_22 = arith.constant 0 : index
    %17 = vector.load %arg11[%c0_21, %c3, %c0_22] : memref<1x23x4xbf16, #tpu.memory_space<vmem>>, vector<1x16x4xbf16>
    %18 = vector.shape_cast %17 : vector<1x16x4xbf16> to vector<16x4xbf16>
    %c8 = arith.constant 8 : index
    %c0_23 = arith.constant 0 : index
    %19 = vector.load %arg2[%c8, %c0_23] : memref<28x128xbf16, #tpu.memory_space<vmem>>, vector<4x128xbf16>
    %cst_24 = arith.constant dense<0.000000e+00> : vector<16x128xf32>
    %20 = tpu.matmul %18, %19, %cst_24 {dimension_numbers = #tpu.dot_dimension_numbers<[1], [0], [0], [1], [0, 0, 1, 1], [], []>} : vector<16x4xbf16>, vector<4x128xbf16>, vector<16x128xf32> -> vector<16x128xf32>
    %21 = arith.addf %16, %20 : vector<16x128xf32>
    %c0_25 = arith.constant 0 : index
    %c4_26 = arith.constant 4 : index
    %c0_27 = arith.constant 0 : index
    %22 = vector.load %arg11[%c0_25, %c4_26, %c0_27] : memref<1x23x4xbf16, #tpu.memory_space<vmem>>, vector<1x16x4xbf16>
    %23 = vector.shape_cast %22 : vector<1x16x4xbf16> to vector<16x4xbf16>
    %c12 = arith.constant 12 : index
    %c0_28 = arith.constant 0 : index
    %24 = vector.load %arg2[%c12, %c0_28] : memref<28x128xbf16, #tpu.memory_space<vmem>>, vector<4x128xbf16>
    %cst_29 = arith.constant dense<0.000000e+00> : vector<16x128xf32>
    %25 = tpu.matmul %23, %24, %cst_29 {dimension_numbers = #tpu.dot_dimension_numbers<[1], [0], [0], [1], [0, 0, 1, 1], [], []>} : vector<16x4xbf16>, vector<4x128xbf16>, vector<16x128xf32> -> vector<16x128xf32>
    %26 = arith.addf %21, %25 : vector<16x128xf32>
    %c0_30 = arith.constant 0 : index
    %c5 = arith.constant 5 : index
    %c0_31 = arith.constant 0 : index
    %27 = vector.load %arg11[%c0_30, %c5, %c0_31] : memref<1x23x4xbf16, #tpu.memory_space<vmem>>, vector<1x16x4xbf16>
    %28 = vector.shape_cast %27 : vector<1x16x4xbf16> to vector<16x4xbf16>
    %c16 = arith.constant 16 : index
    %c0_32 = arith.constant 0 : index
    %29 = vector.load %arg2[%c16, %c0_32] : memref<28x128xbf16, #tpu.memory_space<vmem>>, vector<4x128xbf16>
    %cst_33 = arith.constant dense<0.000000e+00> : vector<16x128xf32>
    %30 = tpu.matmul %28, %29, %cst_33 {dimension_numbers = #tpu.dot_dimension_numbers<[1], [0], [0], [1], [0, 0, 1, 1], [], []>} : vector<16x4xbf16>, vector<4x128xbf16>, vector<16x128xf32> -> vector<16x128xf32>
    %31 = arith.addf %26, %30 : vector<16x128xf32>
    %c0_34 = arith.constant 0 : index
    %c6 = arith.constant 6 : index
    %c0_35 = arith.constant 0 : index
    %32 = vector.load %arg11[%c0_34, %c6, %c0_35] : memref<1x23x4xbf16, #tpu.memory_space<vmem>>, vector<1x16x4xbf16>
    %33 = vector.shape_cast %32 : vector<1x16x4xbf16> to vector<16x4xbf16>
    %c20_36 = arith.constant 20 : index
    %c0_37 = arith.constant 0 : index
    %34 = vector.load %arg2[%c20_36, %c0_37] : memref<28x128xbf16, #tpu.memory_space<vmem>>, vector<4x128xbf16>
    %cst_38 = arith.constant dense<0.000000e+00> : vector<16x128xf32>
    %35 = tpu.matmul %33, %34, %cst_38 {dimension_numbers = #tpu.dot_dimension_numbers<[1], [0], [0], [1], [0, 0, 1, 1], [], []>} : vector<16x4xbf16>, vector<4x128xbf16>, vector<16x128xf32> -> vector<16x128xf32>
    %36 = arith.addf %31, %35 : vector<16x128xf32>
    %c0_39 = arith.constant 0 : index
    %c7 = arith.constant 7 : index
    %c0_40 = arith.constant 0 : index
    %37 = vector.load %arg11[%c0_39, %c7, %c0_40] : memref<1x23x4xbf16, #tpu.memory_space<vmem>>, vector<1x16x4xbf16>
    %38 = vector.shape_cast %37 : vector<1x16x4xbf16> to vector<16x4xbf16>
    %c24 = arith.constant 24 : index
    %c0_41 = arith.constant 0 : index
    %39 = vector.load %arg2[%c24, %c0_41] : memref<28x128xbf16, #tpu.memory_space<vmem>>, vector<4x128xbf16>
    %cst_42 = arith.constant dense<0.000000e+00> : vector<16x128xf32>
    %40 = tpu.matmul %38, %39, %cst_42 {dimension_numbers = #tpu.dot_dimension_numbers<[1], [0], [0], [1], [0, 0, 1, 1], [], []>} : vector<16x4xbf16>, vector<4x128xbf16>, vector<16x128xf32> -> vector<16x128xf32>
    %41 = arith.addf %36, %40 : vector<16x128xf32>
    %c0_43 = arith.constant 0 : index
    %c0_44 = arith.constant 0 : index
    %42 = vector.load %arg3[%c0_43, %c0_44] : memref<1x128xf32, #tpu.memory_space<vmem>>, vector<1x128xf32>
    %43 = vector.broadcast %42 : vector<1x128xf32> to vector<16x128xf32>
    %44 = arith.addf %41, %43 : vector<16x128xf32>
    %cst_45 = arith.constant 0.000000e+00 : f32
    %45 = vector.broadcast %cst_45 : f32 to vector<16x128xf32>
    %46 = arith.maximumf %44, %45 : vector<16x128xf32>
    %47 = vector.shape_cast %46 : vector<16x128xf32> to vector<1x16x128xf32>
    %cst_46 = arith.constant 0.000000e+00 : bf16
    %48 = vector.broadcast %cst_46 : bf16 to vector<1x2x128xbf16>
    %c0_47 = arith.constant 0 : index
    %c0_48 = arith.constant 0 : index
    %c0_49 = arith.constant 0 : index
    %49 = vector.load %arg12[%c0_47, %c0_48, %c0_49] : memref<1x20x128xbf16, #tpu.memory_space<vmem>>, vector<1x2x128xbf16>
    tpu.vector_store %arg12[%c0_47, %c0_48, %c0_49], %48 {strides = array<i32>} : memref<1x20x128xbf16, #tpu.memory_space<vmem>>, vector<1x2x128xbf16>,
    %cst_50 = arith.constant 0.000000e+00 : bf16
    %50 = vector.broadcast %cst_50 : bf16 to vector<1x2x128xbf16>
    %c0_51 = arith.constant 0 : index
    %c18 = arith.constant 18 : index
    %c0_52 = arith.constant 0 : index
    %51 = vector.load %arg12[%c0_51, %c18, %c0_52] : memref<1x20x128xbf16, #tpu.memory_space<vmem>>, vector<1x2x128xbf16>
    tpu.vector_store %arg12[%c0_51, %c18, %c0_52], %50 {strides = array<i32>} : memref<1x20x128xbf16, #tpu.memory_space<vmem>>, vector<1x2x128xbf16>,
    %52 = arith.truncf %47 : vector<1x16x128xf32> to vector<1x16x128xbf16>
    %c0_53 = arith.constant 0 : index
    %c2_54 = arith.constant 2 : index
    %c0_55 = arith.constant 0 : index
    %53 = vector.load %arg12[%c0_53, %c2_54, %c0_55] : memref<1x20x128xbf16, #tpu.memory_space<vmem>>, vector<1x16x128xbf16>
    tpu.vector_store %arg12[%c0_53, %c2_54, %c0_55], %52 {strides = array<i32>} : memref<1x20x128xbf16, #tpu.memory_space<vmem>>, vector<1x16x128xbf16>,
    %c0_56 = arith.constant 0 : index
    %c0_57 = arith.constant 0 : index
    %c0_58 = arith.constant 0 : index
    %54 = vector.load %arg12[%c0_56, %c0_57, %c0_58] : memref<1x20x128xbf16, #tpu.memory_space<vmem>>, vector<1x16x128xbf16>
    %c0_59 = arith.constant 0 : index
    %c1_60 = arith.constant 1 : index
    %c0_61 = arith.constant 0 : index
    %55 = vector.load %arg12[%c0_59, %c1_60, %c0_61] : memref<1x20x128xbf16, #tpu.memory_space<vmem>>, vector<1x16x128xbf16>
    %c0_62 = arith.constant 0 : index
    %c2_63 = arith.constant 2 : index
    %c0_64 = arith.constant 0 : index
    %56 = vector.load %arg12[%c0_62, %c2_63, %c0_64] : memref<1x20x128xbf16, #tpu.memory_space<vmem>>, vector<1x16x128xbf16>
    %c0_65 = arith.constant 0 : index
    %c3_66 = arith.constant 3 : index
    %c0_67 = arith.constant 0 : index
    %57 = vector.load %arg12[%c0_65, %c3_66, %c0_67] : memref<1x20x128xbf16, #tpu.memory_space<vmem>>, vector<1x16x128xbf16>
    %c0_68 = arith.constant 0 : index
    %c4_69 = arith.constant 4 : index
    %c0_70 = arith.constant 0 : index
    %58 = vector.load %arg12[%c0_68, %c4_69, %c0_70] : memref<1x20x128xbf16, #tpu.memory_space<vmem>>, vector<1x16x128xbf16>
    %59 = tpu.concatenate %54, %55, %56, %57, %58 in 2 : vector<1x16x128xbf16>, vector<1x16x128xbf16>, vector<1x16x128xbf16>, vector<1x16x128xbf16>, vector<1x16x128xbf16> -> vector<1x16x640xbf16>
    %60 = vector.shape_cast %59 : vector<1x16x640xbf16> to vector<16x640xbf16>
    %c0_71 = arith.constant 0 : index
    %c0_72 = arith.constant 0 : index
    %61 = vector.load %arg4[%c0_71, %c0_72] : memref<640x256xbf16, #tpu.memory_space<vmem>>, vector<640x256xbf16>
    %cst_73 = arith.constant dense<0.000000e+00> : vector<16x256xf32>
    %62 = tpu.matmul %60, %61, %cst_73 {dimension_numbers = #tpu.dot_dimension_numbers<[1], [0], [0], [1], [0, 0, 1, 1], [], []>} : vector<16x640xbf16>, vector<640x256xbf16>, vector<16x256xf32> -> vector<16x256xf32>
    %c0_74 = arith.constant 0 : index
    %c0_75 = arith.constant 0 : index
    %63 = vector.load %arg5[%c0_74, %c0_75] : memref<1x256xf32, #tpu.memory_space<vmem>>, vector<1x256xf32>
    %64 = vector.broadcast %63 : vector<1x256xf32> to vector<16x256xf32>
    %65 = arith.addf %62, %64 : vector<16x256xf32>
    %cst_76 = arith.constant 0.000000e+00 : f32
    %66 = vector.broadcast %cst_76 : f32 to vector<16x256xf32>
    %67 = arith.maximumf %65, %66 : vector<16x256xf32>
    %68 = vector.shape_cast %67 : vector<16x256xf32> to vector<1x16x256xf32>
    %cst_77 = arith.constant 0.000000e+00 : bf16
    %69 = vector.broadcast %cst_77 : bf16 to vector<1x2x256xbf16>
    %c0_78 = arith.constant 0 : index
    %c0_79 = arith.constant 0 : index
    %c0_80 = arith.constant 0 : index
    %70 = vector.load %arg13[%c0_78, %c0_79, %c0_80] : memref<1x19x256xbf16, #tpu.memory_space<vmem>>, vector<1x2x256xbf16>
    tpu.vector_store %arg13[%c0_78, %c0_79, %c0_80], %69 {strides = array<i32>} : memref<1x19x256xbf16, #tpu.memory_space<vmem>>, vector<1x2x256xbf16>,
    %cst_81 = arith.constant 0.000000e+00 : bf16
    %71 = vector.broadcast %cst_81 : bf16 to vector<1x1x256xbf16>
    %c0_82 = arith.constant 0 : index
    %c18_83 = arith.constant 18 : index
    %c0_84 = arith.constant 0 : index
    %72 = vector.load %arg13[%c0_82, %c18_83, %c0_84] : memref<1x19x256xbf16, #tpu.memory_space<vmem>>, vector<1x1x256xbf16>
    tpu.vector_store %arg13[%c0_82, %c18_83, %c0_84], %71 {strides = array<i32>} : memref<1x19x256xbf16, #tpu.memory_space<vmem>>, vector<1x1x256xbf16>,
    %73 = arith.truncf %68 : vector<1x16x256xf32> to vector<1x16x256xbf16>
    %c0_85 = arith.constant 0 : index
    %c2_86 = arith.constant 2 : index
    %c0_87 = arith.constant 0 : index
    %74 = vector.load %arg13[%c0_85, %c2_86, %c0_87] : memref<1x19x256xbf16, #tpu.memory_space<vmem>>, vector<1x16x256xbf16>
    tpu.vector_store %arg13[%c0_85, %c2_86, %c0_87], %73 {strides = array<i32>} : memref<1x19x256xbf16, #tpu.memory_space<vmem>>, vector<1x16x256xbf16>,
    %c0_88 = arith.constant 0 : index
    %c1_89 = arith.constant 1 : index
    %c0_90 = arith.constant 0 : index
    %75 = vector.load %arg13[%c0_88, %c1_89, %c0_90] : memref<1x19x256xbf16, #tpu.memory_space<vmem>>, vector<1x16x256xbf16>
    %c0_91 = arith.constant 0 : index
    %c2_92 = arith.constant 2 : index
    %c0_93 = arith.constant 0 : index
    %76 = vector.load %arg13[%c0_91, %c2_92, %c0_93] : memref<1x19x256xbf16, #tpu.memory_space<vmem>>, vector<1x16x256xbf16>
    %c0_94 = arith.constant 0 : index
    %c3_95 = arith.constant 3 : index
    %c0_96 = arith.constant 0 : index
    %77 = vector.load %arg13[%c0_94, %c3_95, %c0_96] : memref<1x19x256xbf16, #tpu.memory_space<vmem>>, vector<1x16x256xbf16>
    %78 = tpu.concatenate %75, %76, %77 in 2 : vector<1x16x256xbf16>, vector<1x16x256xbf16>, vector<1x16x256xbf16> -> vector<1x16x768xbf16>
    %79 = vector.shape_cast %78 : vector<1x16x768xbf16> to vector<16x768xbf16>
    %c0_97 = arith.constant 0 : index
    %c0_98 = arith.constant 0 : index
    %80 = vector.load %arg6[%c0_97, %c0_98] : memref<768x128xbf16, #tpu.memory_space<vmem>>, vector<768x128xbf16>
    %cst_99 = arith.constant dense<0.000000e+00> : vector<16x128xf32>
    %81 = tpu.matmul %79, %80, %cst_99 {dimension_numbers = #tpu.dot_dimension_numbers<[1], [0], [0], [1], [0, 0, 1, 1], [], []>} : vector<16x768xbf16>, vector<768x128xbf16>, vector<16x128xf32> -> vector<16x128xf32>
    %c0_100 = arith.constant 0 : index
    %c0_101 = arith.constant 0 : index
    %82 = vector.load %arg7[%c0_100, %c0_101] : memref<1x128xf32, #tpu.memory_space<vmem>>, vector<1x128xf32>
    %83 = vector.broadcast %82 : vector<1x128xf32> to vector<16x128xf32>
    %84 = arith.addf %81, %83 : vector<16x128xf32>
    %cst_102 = arith.constant 0.000000e+00 : f32
    %85 = vector.broadcast %cst_102 : f32 to vector<16x128xf32>
    %86 = arith.maximumf %84, %85 : vector<16x128xf32>
    %87 = vector.shape_cast %86 : vector<16x128xf32> to vector<1x16x128xf32>
    %cst_103 = arith.constant dense<0.000000e+00> : vector<1x128xf32>
    %88 = vector.multi_reduction <add>, %87, %cst_103 [1] : vector<1x16x128xf32> to vector<1x128xf32>
    %89 = arith.truncf %88 : vector<1x128xf32> to vector<1x128xbf16>
    %c0_104 = arith.constant 0 : index
    %c0_105 = arith.constant 0 : index
    %90 = vector.load %arg8[%c0_104, %c0_105] : memref<128x8xbf16, #tpu.memory_space<vmem>>, vector<128x8xbf16>
    %cst_106 = arith.constant dense<0.000000e+00> : vector<1x8xf32>
    %91 = tpu.matmul %89, %90, %cst_106 {dimension_numbers = #tpu.dot_dimension_numbers<[1], [0], [0], [1], [0, 0, 1, 1], [], []>} : vector<1x128xbf16>, vector<128x8xbf16>, vector<1x8xf32> -> vector<1x8xf32>
    %c0_107 = arith.constant 0 : index
    %c0_108 = arith.constant 0 : index
    %92 = vector.load %arg9[%c0_107, %c0_108] : memref<1x8xf32, #tpu.memory_space<vmem>>, vector<1x8xf32>
    %93 = arith.addf %91, %92 : vector<1x8xf32>
    %c0_109 = arith.constant 0 : index
    %c0_110 = arith.constant 0 : index
    %c0_111 = arith.constant 0 : index
    %94 = vector.load %arg10[%c0_109, %c0_110, %c0_111] : memref<1x1x8xf32, #tpu.memory_space<vmem>>, vector<1x1x8xf32>
    %95 = vector.shape_cast %94 : vector<1x1x8xf32> to vector<1x8xf32>
    %96 = vector.shape_cast %93 : vector<1x8xf32> to vector<1x1x8xf32>
    tpu.vector_store %arg10[%c0_109, %c0_110, %c0_111], %96 {strides = array<i32>} : memref<1x1x8xf32, #tpu.memory_space<vmem>>, vector<1x1x8xf32>,
    return
  }
  func.func @transform_0(%arg0: i32) -> (i32, i32, i32) {
    %c0_i32 = arith.constant 0 : i32
    %c0_i32_0 = arith.constant 0 : i32
    %c0_i32_1 = arith.constant 0 : i32
    return %arg0, %c0_i32, %c0_i32_0 : i32, i32, i32
  }
  func.func @transform_1(%arg0: i32) -> (i32, i32) {
    %c0_i32 = arith.constant 0 : i32
    %c0_i32_0 = arith.constant 0 : i32
    %c0_i32_1 = arith.constant 0 : i32
    return %c0_i32, %c0_i32_0 : i32, i32
  }
  func.func @transform_2(%arg0: i32) -> (i32, i32) {
    %c0_i32 = arith.constant 0 : i32
    %c0_i32_0 = arith.constant 0 : i32
    %c0_i32_1 = arith.constant 0 : i32
    return %c0_i32, %c0_i32_0 : i32, i32
  }
  func.func @transform_3(%arg0: i32) -> (i32, i32) {
    %c0_i32 = arith.constant 0 : i32
    %c0_i32_0 = arith.constant 0 : i32
    %c0_i32_1 = arith.constant 0 : i32
    return %c0_i32, %c0_i32_0 : i32, i32
  }
  func.func @transform_4(%arg0: i32) -> (i32, i32) {
    %c0_i32 = arith.constant 0 : i32
    %c0_i32_0 = arith.constant 0 : i32
    %c0_i32_1 = arith.constant 0 : i32
    return %c0_i32, %c0_i32_0 : i32, i32
  }
  func.func @transform_5(%arg0: i32) -> (i32, i32) {
    %c0_i32 = arith.constant 0 : i32
    %c0_i32_0 = arith.constant 0 : i32
    %c0_i32_1 = arith.constant 0 : i32
    return %c0_i32, %c0_i32_0 : i32, i32
  }
  func.func @transform_6(%arg0: i32) -> (i32, i32) {
    %c0_i32 = arith.constant 0 : i32
    %c0_i32_0 = arith.constant 0 : i32
    %c0_i32_1 = arith.constant 0 : i32
    return %c0_i32, %c0_i32_0 : i32, i32
  }
  func.func @transform_7(%arg0: i32) -> (i32, i32) {
    %c0_i32 = arith.constant 0 : i32
    %c0_i32_0 = arith.constant 0 : i32
    %c0_i32_1 = arith.constant 0 : i32
    return %c0_i32, %c0_i32_0 : i32, i32
  }
  func.func @transform_8(%arg0: i32) -> (i32, i32) {
    %c0_i32 = arith.constant 0 : i32
    %c0_i32_0 = arith.constant 0 : i32
    %c0_i32_1 = arith.constant 0 : i32
    return %c0_i32, %c0_i32_0 : i32, i32
  }
  func.func @transform_9(%arg0: i32) -> (i32, i32, i32) {
    %c0_i32 = arith.constant 0 : i32
    %c0_i32_0 = arith.constant 0 : i32
    %c0_i32_1 = arith.constant 0 : i32
    return %arg0, %c0_i32, %c0_i32_0 : i32, i32, i32
  }
}

</mosaic_0001>

<bundles_post_ra>
// kernel: tpu_custom_call.1
= control target key start
LH: loop header
LB: loop body
LE: loop exit
PB: predicated region body
PF: predicated region fallthrough
CT: control target
= control target key end

     0   :  { %s3433_s0 = inlined_call_operand.vmem [shape: bf16[2,16,4], index: 0, kind: input, shape index: {}]   ;;  %s3434_s1 = inlined_call_operand.vmem [shape: bf16[28,128], index: 1, kind: input, shape index: {}]   ;;  %s3435_s2 = inlined_call_operand.vmem [shape: f32[1,128], index: 2, kind: input, shape index: {}]   ;;  %s3436_s3 = inlined_call_operand.hbm [shape: bf16[640,256], index: 3, kind: input, shape index: {}]   ;;  %s3437_s4 = inlined_call_operand.vmem [shape: f32[1,256], index: 4, kind: input, shape index: {}]   ;;  %s3438_s5 = inlined_call_operand.hbm [shape: bf16[768,128], index: 5, kind: input, shape index: {}]   ;;  %s3439_s6 = inlined_call_operand.vmem [shape: f32[1,128], index: 6, kind: input, shape index: {}]   ;;  %s3440_s7 = inlined_call_operand.vmem [shape: bf16[128,8], index: 7, kind: input, shape index: {}]   ;;  %s3441_s8 = inlined_call_operand.vmem [shape: f32[1,8], index: 8, kind: input, shape index: {}]   ;;  %s3442_s9 = inlined_call_operand.hbm [shape: f32[2,1,8], index: 9, kind: output, shape index: {}]  }
   0x1   :  { %3443 = sst [smem:[#allocation14_spill]] %s3436_s3 }
   0x2   :  { %14 = vsyncpa [#allocation6], 0 }
   0x3   :  { %15 = vsyncpa [#allocation9], 0 }
   0x4   :  { %16 = vsyncpa [#allocation7], 0 }
   0x5   :  { %18 = vsyncpa [#allocation7 + $0x1], 0  ;;  %s3172_s30 = smov 0   ;;  %s3174_s10 = smov 0  }
   0x6   :  { %s3176_s11 = smov 0   ;;  %s3178_s12 = smov 0  }
   0x7 LB: > { %s3193_s13 = sadd.s32 4294967295, %s3113_s12   ;;  %s2208_s14 = sadd.s32 4294967294, %s3113_s12   ;;  %s3113_s12 = sphi %s3178_s12, %s3459_s12   ;;  %s3109_s11 = sphi %s3176_s11, %s3458_s11   ;;  %s3105_s10 = sphi %s3174_s10, %s3457_s10   ;;  %s3101_s30 = sphi %s3172_s30, %s3456_s30  }
   0x8   : > { %s3197_s15 = sadd.s32 1, %s3113_s12   ;;  %s225_s16 = sadd.s32 1, %s3109_s11 }
   0x9   : > { %s222_s17 = ssub.s32 %s3113_s12, %s3197_s15  ;;  %p235_p0 = scmp.ne.s32.totalorder %s3109_s11, %s3105_s10 }
   0xa   : > { %p223_p1 = scmp.eq.s32.totalorder %s222_s17, 0  ;;  %p236_p2 = scmp.eq.s32.totalorder %s3193_s13, 1 }
   0xb   : > { %p241_p3 = scmp.ne.s32.totalorder %s3105_s10, %s3101_s30  ;;  %p242_p4 = scmp.eq.s32.totalorder %s2208_s14, 1 }
   0xc   : > { %s3208_s18 = scalar_select %p223_p1, %s3109_s11, %s225_s16  }
   0xd   : > { %p3210_p5 = por %p236_p2, %p235_p0  ;;  %p3214_p6 = por %p242_p4, %p241_p3 }
   0xe   : > { %p2209_p7 = scmp.ge.s32.totalorder %s3113_s12, 1  ;;  %p249_p8 = scmp.lt.s32.totalorder %s3113_s12, 3 }
   0xf   : > { %p2937_p9 = scmp.eq.s32.totalorder %s3193_s13, 0  ;;  %s3447_s3 = sld [smem:[#allocation14_spill]] }
  0x10   : > { %p3221_p10 = pnand %p2209_p7, %p249_p8  ;;  %s3115_s25 = smov [#allocation5]  }
  0x11   : > { %s268_s26 = sshll.u32 %s3115_s25, 4  ;;  %s283_s29 = sshll.u32 %s3438_s5, 4  ;;  %s269_s26 = int_to_ptr.vmem [resolvable:$true] %s268_s26  ;;  %s284_s29 = int_to_ptr.hbm [resolvable:$true] %s283_s29 }
  0x12   : > { %p2926_p11 = pneg %p3221_p10  ;;  %s3116_s14 = smov 128  }
  0x13   : > { %s3117_s16 = smov 8   ;;  %s3118_s17 = smov [#allocation8]  }
  0x14   : > { %p2927_p12 = pnand %p2937_p9, %p2926_p11  ;;  %s285_s22 = sshll.u32 %s3118_s17, 4  ;;  %s286_s22 = int_to_ptr.vmem [resolvable:$true] %s285_s22 }
  0x15   : > { %s266_s24 = sshll.u32 %s3447_s3, 4  ;;  %s3119_s23 = smov 64   ;;  %s267_s24 = int_to_ptr.hbm [resolvable:$true] %s266_s24 }
  0x16   : > { %2929 = dma.hbm_to_vmem [thread:$0]  (!%p2927_p12), %s267_s24, 10240, %s269_s26, [#allocation6], %s3116_s14, %s3116_s14, %s3117_s16  }
  0x17   : > { %s3120_s3 = smov 4   ;;  %318 = sbr.rel (%p3221_p10) target bundleno = 757 (0x2f5), region = 56 }
  0x18   : > { %2932 = dma.hbm_to_vmem [thread:$0]  (!%p2927_p12), %s284_s29, 6144, %s286_s22, [#allocation9], %s3119_s23, %s3119_s23, %s3120_s3  }
  0x1c   : > { %3088 = dma.done.wait (%p2937_p9), [#allocation6], 10240  }
  0x1d   : > { %3090 = vsyncadd (%p2937_p9), [#allocation6], 4294957056 }
  0x1e   : > { %3092 = dma.done.wait (%p2937_p9), [#allocation9], 6144  }
  0x1f   : > { %3094 = vsyncadd (%p2937_p9), [#allocation9], 4294961152  ;;  %p359_p13 = scmp.lt.s32.totalorder %s3193_s13, 1  ;;  %vm367_vm0 = vcmask 25600   ;;  %v3121_v0 = vmov 0   ;;  %vm369_vm2 = vcmask 27650   ;;  %s2127_s27 = scalar_lea.hbm %s3442_s9, %s3193_s13 }
  0x20   : > { %368 = vst.msk [vmem:[#allocation2] sm:$0x3] %vm367_vm0, %v3121_v0  ;;  %vm370_vm1 = vsmask.f32 3328  ;;  %vm377_vm3 = vcmask 1041408   ;;  %vm378_vm4 = vcmask 1045508  }
  0x21   : > { %s360_s3 = scalar_select %p359_p13, %s3193_s13, 1  ;;  %686 = vst [vmem:[#allocation3] sm:$0x1] %v3121_v0  ;;  %vm390_vm5 = vcmask 27648   ;;  %vm3252_vm6 = vmand %vm369_vm2, %vm370_vm1  ;;  %vm558_vm7 = vsmask.f32 5376 }
  0x22   : > { %687 = vst [vmem:[#allocation3 + $0x8] sm:$0x2] %v3121_v0  ;;  %v398_v4 = vld [vmem:[%s3434_s1] sm:$0xc]  ;;  %v396_v8 = vld [vmem:[%s3434_s1] sm:$0x3]  ;;  %vm3263_vm8 = vmor %vm377_vm3, %vm378_vm4 }
  0x23   : > { %s2771_s21 = sshll.u32 %s360_s3, 3  ;;  %1399 = vst [vmem:[#allocation4 + $0x8] sm:$0x11] %v3121_v0  ;;  %v412_v7 = vunpack.c.l.b16 %v398_v4  ;;  %v372_v9 = vld [vmem:[#allocation2 + $0x8] sm:$0xc]  ;;  %v457_v11 = vsel %vm377_vm3, %v396_v8, 0 }
  0x24   : > { %s363_s26 = scalar_lea.vmem %s3433_s0, %s2771_s21  ;;  %v373_v12 = vsel %vm3252_vm6, 0, %v372_v9  ;;  %v474_v13 = vld [vmem:[%s3434_s1 + $0x4] sm:$0x3]  ;;  %v519_v14 = vld [vmem:[%s3434_s1 + $0x4] sm:$0xc]  ;;  %466 = vmatpush.bf16.msra.mxu1 %v457_v11  ;;  %vm1400_vm9 = vcmask 1041409  }
  0x25   : > { %v365_v2 = vld [vmem:[%s363_s26] sm:$0xf]  ;;  %v366_v3 = vld [vmem:[%s363_s26 + $0x4] sm:$0xf]  ;;  %v413_v17 = vpack.c.b16 %v412_v7, %v412_v7  ;;  %v500_v18 = vsel %vm377_vm3, %v474_v13, 0  ;;  %v528_v19 = vunpack.c.l.b16 %v519_v14  ;;  %vm1403_vm10 = vcmask 1045509  }
  0x26   : > { %v380_v5 = vrot.slane %v365_v2, 6  ;;  %v382_v6 = vrot.slane %v366_v3, 6  ;;  %374 = vst [vmem:[#allocation2 + $0x8] sm:$0xc] %v373_v12  ;;  %509 = vmatpush.bf16.msra.mxu2 %v500_v18  ;;  %v634_v20 = vld [vmem:[%s3434_s1 + $0xc] sm:$0x3]  ;;  %vm3295_vm12 = vmand %vm1403_vm10, %vm558_vm7 }
  0x27   : > { %v554_v21 = vld [vmem:[%s3434_s1 + $0x8] sm:$0x3]  ;;  %v414_v23 = vrot.slane %v413_v17, 2  ;;  %v660_v24 = vsel %vm377_vm3, %v634_v20, 0  ;;  %v529_v26 = vpack.c.b16 %v528_v19, %v528_v19  ;;  %v599_v27 = vld [vmem:[%s3434_s1 + $0x8] sm:$0xc] }
  0x28   : > { %v381_v15 = vrot.slane %v380_v5, 4  ;;  %v384_v16 = vrot.slane %v382_v6, 4  ;;  %389 = vst.msk [vmem:[#allocation2] sm:$0xc] %vm369_vm2, %v380_v5  ;;  %v580_v25 = vsel %vm377_vm3, %v554_v21, 0  ;;  %v608_v29 = vunpack.c.l.b16 %v599_v27  ;;  %s357_s24 = sand.u32 1, %s3105_s10  }
  0x29   : > { %v421_v28 = vsel %vm377_vm3, %v414_v23, 0  ;;  %vm1401_vm11 = vsmask.f32 1280  ;;  %v1406_v31 = vld [vmem:[#allocation4] sm:$0x22]  ;;  %v530_v32 = vrot.slane %v529_v26, 2 }
  0x2a   : > { %v383_v22 = vsel %vm3263_vm8, %v381_v15, %v382_v6  ;;  %392 = vst.msk [vmem:[#allocation2 + $0x8] sm:$0x3] %vm367_vm0, %v384_v16  ;;  %669 = vmatpush.bf16.msrb.mxu2 %v660_v24  ;;  %430 = vmatpush.bf16.msra.mxu0 %v421_v28  ;;  %vm1402_vm13 = vmand %vm1400_vm9, %vm1401_vm11  ;;  %vm407_vm14 = vcmask 1046528   ;;  %v609_v33 = vpack.c.b16 %v608_v29, %v608_v29  ;;  %v2283_v34 = vld [vmem:[#allocation5 + $0x70] sm:$0xf]  ;;  %vm415_vm0 = vcmask 31744  }
  0x2b   : > { %391 = vst.msk [vmem:[#allocation2 + $0x4] sm:$0xf] %vm390_vm5, %v383_v22  ;;  %vm1405_vm15 = vmor %vm3295_vm12, %vm1402_vm13  ;;  %v2787_v35 = vld [vmem:[#allocation5 + $0x74] sm:$0xf0]  ;;  %vm440_vm1 = vsmask.f32 7424 }
  0x2c   : > { %v535_v37 = vsel %vm377_vm3, %v530_v32, 0  ;;  %v1407_v39 = vsel %vm1405_vm15, 0, %v1406_v31  ;;  %v2284_v40 = vor.u32 %v2787_v35, %v2283_v34  ;;  %vm523_vm2 = vcmask 1045504   ;;  %s358_s14 = scalar_lea.vmem [#allocation10], %s357_s24  ;;  %s2131_s17 = sshll.u32 %s2127_s27, 4  ;;  %s2132_s17 = int_to_ptr.hbm [resolvable:$true] %s2131_s17 }
  0x2d   : > { %544 = vmatpush.bf16.msra.mxu3 %v535_v37  ;;  %v610_v41 = vrot.slane %v609_v33, 2  ;;  %1408 = vst [vmem:[#allocation4] sm:$0x22] %v1407_v39  ;;  %vm478_vm4 = vsmask.f32 6400  ;;  %vm692_vm6 = vcmask 1040384  }
  0x2e   : > { %589 = vmatpush.bf16.msrb.mxu0 %v580_v25  ;;  %vm638_vm5 = vsmask.f32 4352  ;;  %s2129_s16 = sshll.u32 %s358_s14, 4  ;;  %vm2116_vm9 = vcmask 57344   ;;  %s2119_s22 = scalar_lea.sflag [#allocation7], %s357_s24  ;;  %s2130_s16 = int_to_ptr.vmem [resolvable:$true] %s2129_s16 }
  0x2f   : > { %v397_v36 = vld [vmem:[#allocation2] sm:$0xe]  ;;  %v615_v52 = vsel %vm377_vm3, %v610_v41, 0  ;;  %vm603_vm3 = vcmask 1044480   ;;  %s3057_s23 = sshra.s32 %s2132_s17, 4  ;;  %s3063_s25 = scalar_lea.hbm %s3442_s9, 2  ;;  %s3058_s23 = int_to_ptr.hbm [resolvable:$true] %s3057_s23 }
  0x30   : > { %v518_v38 = vld [vmem:[#allocation2] sm:$0xc]  ;;  %v402_v44 = vunpack.c.l.b16 %v397_v36  ;;  %624 = vmatpush.bf16.msrb.mxu1 %v615_v52  ;;  %s3059_s3 = scalar_lea.hbm %s3058_s23, 1  ;;  %p3064_p3 = scmp.lt.s32.totalorder %s3058_s23, %s3442_s9 }
  0x31   : > { %v598_v42 = vld [vmem:[#allocation2] sm:$0x8]  ;;  %v395_v43 = vld [vmem:[#allocation2 + $0x8] sm:$0x1]  ;;  %v521_v46 = vunpack.c.l.b16 %v518_v38  ;;  %1255 = vmatpush.bf16.msrb.mxu3 %v2284_v40  ;;  %p3060_p0 = scmp.ne.s32.totalorder %s3058_s23, %s3059_s3  ;;  %p3065_p4 = scmp.lt.s32.totalorder %s3063_s25, %s3059_s3 }
  0x32   : > { %v473_v45 = vld [vmem:[#allocation2 + $0x8] sm:$0x3]  ;;  %v601_v48 = vunpack.c.l.b16 %v598_v42  ;;  %v2909_v49 = vld [vmem:[#allocation2] sm:$0xff]   ;;  %v404_v50 = vunpack.c.l.b16 %v395_v43 }
  0x33   : > { %v553_v47 = vld [vmem:[#allocation2 + $0x8] sm:$0x7]  ;;  %v476_v51 = vunpack.c.l.b16 %v473_v45  ;;  %v2911_v55 = vunpack.c.h.b16 %v2909_v49  ;;  %v442_v56 = vshrl.u32 %v2909_v49, 16  ;;  %v444_v57 = vshll.u32 %v2909_v49, 16  ;;  %v2275_v49 = vld [vmem:[#allocation5 + $0x60] sm:$0xf]  ;;  %p3061_p1 = pnand %p3060_p0, %p3210_p5  ;;  %p3066_p7 = por %p3065_p4, %p3064_p3 }
  0x34   : > { %v556_v53 = vunpack.c.l.b16 %v553_v47  ;;  %v633_v54 = vld [vmem:[#allocation2 + $0x8] sm:$0xf]  ;;  %v406_v58 = vpack.c.b16 %v404_v50, %v404_v50  ;;  %v2785_v50 = vld [vmem:[#allocation5 + $0x64] sm:$0xf0]  ;;  %v2267_v52 = vld [vmem:[#allocation5 + $0x50] sm:$0xf] }
  0x35   : > { %v477_v59 = vpack.c.b16 %v476_v51, %v476_v51  ;;  %v636_v61 = vunpack.c.l.b16 %v633_v54  ;;  %v405_v62 = vpack.c.b16 %v2911_v55, %v402_v44  ;;  %v446_v63 = vrot.slane %v444_v57, 1  ;;  %v2347_v54 = vld [vmem:[#allocation5 + $0xf0] sm:$0xf]  ;;  %p3062_p2 = pneg %p3061_p1 }
  0x36   : > { %v557_v60 = vpack.c.b16 %v556_v53, %v556_v53  ;;  %v522_v0 = vpack.c.b16 %v2911_v55, %v521_v46  ;;  %v602_v1 = vpack.c.b16 %v2911_v55, %v601_v48  ;;  %v409_v2 = vrot.slane %v406_v58, 1  ;;  %v2783_v53 = vld [vmem:[#allocation5 + $0x54] sm:$0xf0] }
  0x37   : > { %v449_v3 = vshll.u32 %v406_v58, 16  ;;  %v488_v4 = vshrl.u32 %v477_v59, 16  ;;  %v491_v5 = vshll.u32 %v477_v59, 16  ;;  %v408_v6 = vrot.slane %v405_v62, 1  ;;  %v2259_v58 = vld [vmem:[#allocation5 + $0x40] sm:$0xf]  ;;  %p3067_p8 = pnand %p3066_p7, %p3062_p2 }
  0x38   : > { %v447_v7 = vor.u32 %v446_v63, %v442_v56  ;;  %v480_v8 = vshrl.u32 %v405_v62, 16  ;;  %v483_v9 = vshll.u32 %v405_v62, 16  ;;  %v524_v13 = vrot.slane %v522_v0, 2  ;;  %v2803_v56 = vld [vmem:[#allocation5 + $0xf4] sm:$0xf0] }
  0x39   : > { %v451_v10 = vrot.slane %v449_v3, 1  ;;  %v490_v11 = vrot.slane %v488_v4, 1  ;;  %v493_v12 = vrot.slane %v491_v5, 2  ;;  %v410_v14 = vsel %vm407_vm14, %v408_v6, %v409_v2  ;;  %v2801_v62 = vld [vmem:[#allocation5 + $0xe4] sm:$0xf0] }
  0x3a   : > { %v482_v15 = vrot.slane %v480_v8, 1  ;;  %v485_v16 = vrot.slane %v483_v9, 2  ;;  %v525_v17 = vrot.slane %v477_v59, 2  ;;  %2218 = vmatmul.msk.bf16.vlgmr.msra.gmra.mxu0 %vm415_vm0, %v410_v14  ;;  %v560_v20 = vshrl.u32 %v522_v0, 16  ;;  %v2781_v59 = vld [vmem:[#allocation5 + $0x44] sm:$0xf0] }
  0x3b   : > { %v452_v18 = vsel %vm440_vm1, %v447_v7, %v451_v10  ;;  %v494_v19 = vor.u32 %v493_v12, %v490_v11  ;;  %v563_v21 = vshll.u32 %v522_v0, 16  ;;  %v568_v24 = vshrl.u32 %v557_v60, 16  ;;  %v2251_v0 = vld [vmem:[#allocation5 + $0x30] sm:$0xf]  ;;  %v2799_v4 = vld [vmem:[#allocation5 + $0xd4] sm:$0xf0] }
  0x3c   : > { %2219 = vmatmul.msk.bf16.vlgmr.msra.gmra.mxu1 %vm415_vm0, %v452_v18  ;;  %v486_v22 = vor.u32 %v485_v16, %v482_v15  ;;  %v526_v23 = vsel %vm523_vm2, %v524_v13, %v525_v17  ;;  %v571_v25 = vshll.u32 %v557_v60, 16  ;;  %v637_v27 = vpack.c.b16 %v636_v61, %v636_v61  ;;  %v2339_v61 = vld [vmem:[#allocation5 + $0xe0] sm:$0xf]  ;;  %v2331_v3 = vld [vmem:[#allocation5 + $0xd0] sm:$0xf] }
  0x3d   : > { %2221 = vmatmul.msk.bf16.vlgmr.msra.gmra.mxu3 %vm415_vm0, %v526_v23  ;;  %v562_v28 = vrot.slane %v560_v20, 2  ;;  %v565_v29 = vrot.slane %v563_v21, 3  ;;  %v570_v30 = vrot.slane %v568_v24, 2  ;;  %v640_v32 = vshrl.u32 %v602_v1, 16  ;;  %v2243_v6 = vld [vmem:[#allocation5 + $0x20] sm:$0xf] }
  0x3e   : > { %v495_v26 = vsel %vm478_vm4, %v486_v22, %v494_v19  ;;  %v573_v31 = vrot.slane %v571_v25, 3  ;;  %v643_v33 = vshll.u32 %v602_v1, 16  ;;  %v648_v34 = vshrl.u32 %v637_v27, 16  ;;  %v2777_v7 = vld [vmem:[#allocation5 + $0x24] sm:$0xf0] }
  0x3f   : > { %2220 = vmatmul.msk.bf16.vlgmr.msra.gmra.mxu2 %vm415_vm0, %v495_v26  ;;  %v651_v35 = vshll.u32 %v637_v27, 16  ;;  %v566_v36 = vor.u32 %v565_v29, %v562_v28  ;;  %v642_v38 = vrot.slane %v640_v32, 3  ;;  %v604_v42 = vrot.slane %v602_v1, 3  ;;  %v2779_v1 = vld [vmem:[#allocation5 + $0x34] sm:$0xf0] }
  0x40   : > { %v574_v37 = vor.u32 %v573_v31, %v570_v30  ;;  %v645_v39 = vrot.slane %v643_v33, 4  ;;  %v650_v40 = vrot.slane %v648_v34, 3  ;;  %v605_v43 = vrot.slane %v557_v60, 3  ;;  %v2411_v9 = vld [vmem:[#allocation5 + $0x170] sm:$0xf] }
  0x41   : > { %v653_v41 = vrot.slane %v651_v35, 4  ;;  %v2276_v51 = vor.u32 %v2785_v50, %v2275_v49  ;;  %v2268_v55 = vor.u32 %v2783_v53, %v2267_v52  ;;  %v2348_v57 = vor.u32 %v2803_v56, %v2347_v54  ;;  %v2819_v10 = vld [vmem:[#allocation5 + $0x174] sm:$0xf0]  ;;  %v2323_v12 = vld [vmem:[#allocation5 + $0xc0] sm:$0xf] }
  0x42   : > { %v575_v44 = vsel %vm558_vm7, %v566_v36, %v574_v37  ;;  %v646_v45 = vor.u32 %v645_v39, %v642_v38  ;;  %v606_v47 = vsel %vm603_vm3, %v604_v42, %v605_v43  ;;  %v2260_v60 = vor.u32 %v2781_v59, %v2259_v58  ;;  %v2797_v13 = vld [vmem:[#allocation5 + $0xc4] sm:$0xf0]  ;;  %v2235_v15 = vld [vmem:[#allocation5 + $0x10] sm:$0xf]  ;;  %v2775_v16 = vld [vmem:[#allocation5 + $0x14] sm:$0xf0] }
  0x43   : > { %v654_v46 = vor.u32 %v653_v41, %v650_v40  ;;  %1256 = vmatpush.bf16.msrb.mxu3 %v2276_v51  ;;  %1269 = vmatpush.bf16.msra.mxu0 %v2348_v57  ;;  %v2340_v63 = vor.u32 %v2801_v62, %v2339_v61  ;;  %v2252_v2 = vor.u32 %v2779_v1, %v2251_v0  ;;  %v2403_v18 = vld [vmem:[#allocation5 + $0x160] sm:$0xf]  ;;  %v2817_v19 = vld [vmem:[#allocation5 + $0x164] sm:$0xf0]  ;;  %v2475_v20 = vld [vmem:[#allocation5 + $0x1f0] sm:$0xf] }
  0x44   : > { %v2332_v5 = vor.u32 %v2799_v4, %v2331_v3  ;;  %v2244_v8 = vor.u32 %v2777_v7, %v2243_v6  ;;  %v2412_v11 = vor.u32 %v2819_v10, %v2411_v9  ;;  %v2324_v14 = vor.u32 %v2797_v13, %v2323_v12  ;;  %v2835_v22 = vld [vmem:[#allocation5 + $0x1f4] sm:$0xf0]  ;;  %v2315_v23 = vld [vmem:[#allocation5 + $0xb0] sm:$0xf]  ;;  %v2227_v27 = vld [vmem:[#allocation5] sm:$0xf] }
  0x45   : > { %v655_v48 = vsel %vm638_vm5, %v646_v45, %v654_v46  ;;  %v2236_v17 = vor.u32 %v2775_v16, %v2235_v15  ;;  %v2404_v21 = vor.u32 %v2817_v19, %v2403_v18  ;;  %v2795_v24 = vld [vmem:[#allocation5 + $0xb4] sm:$0xf0]  ;;  %v2476_v25 = vor.u32 %v2835_v22, %v2475_v20  ;;  %v2773_v28 = vld [vmem:[#allocation5 + $0x4] sm:$0xf0]  ;;  %v2395_v30 = vld [vmem:[#allocation5 + $0x150] sm:$0xf] }
  0x46   : > { %1283 = vmatpush.bf16.msra.mxu1 %v2412_v11  ;;  %v2316_v26 = vor.u32 %v2795_v24, %v2315_v23  ;;  %v2228_v29 = vor.u32 %v2773_v28, %v2227_v27  ;;  %v2815_v31 = vld [vmem:[#allocation5 + $0x154] sm:$0xf0]  ;;  %v2467_v32 = vld [vmem:[#allocation5 + $0x1e0] sm:$0xf]  ;;  %v2833_v34 = vld [vmem:[#allocation5 + $0x1e4] sm:$0xf0] }
  0x47   : > { %1257 = vmatpush.bf16.msrb.mxu3 %v2268_v55  ;;  %1270 = vmatpush.bf16.msra.mxu0 %v2340_v63  ;;  %v2396_v33 = vor.u32 %v2815_v31, %v2395_v30  ;;  %v2539_v35 = vld [vmem:[#allocation5 + $0x270] sm:$0xf]  ;;  %v2851_v36 = vld [vmem:[#allocation5 + $0x274] sm:$0xf0]  ;;  %v2468_v37 = vor.u32 %v2833_v34, %v2467_v32  ;;  %v2307_v39 = vld [vmem:[#allocation5 + $0xa0] sm:$0xf] }
  0x48   : > { %1297 = vmatpush.bf16.msra.mxu2 %v2476_v25  ;;  %v2540_v38 = vor.u32 %v2851_v36, %v2539_v35  ;;  %v2793_v40 = vld [vmem:[#allocation5 + $0xa4] sm:$0xf0]  ;;  %v2387_v42 = vld [vmem:[#allocation5 + $0x140] sm:$0xf]  ;;  %v2459_v45 = vld [vmem:[#allocation5 + $0x1d0] sm:$0xf] }
  0x49   : > { %v2308_v41 = vor.u32 %v2793_v40, %v2307_v39  ;;  %v2813_v43 = vld [vmem:[#allocation5 + $0x144] sm:$0xf0]  ;;  %v2831_v46 = vld [vmem:[#allocation5 + $0x1d4] sm:$0xf0]  ;;  %v2299_v50 = vld [vmem:[#allocation5 + $0x90] sm:$0xf] }
  0x4a   : > { %2222 = vmatmul.msk.bf16.vlgmr.msrb.gmra.mxu0 %vm415_vm0, %v575_v44  ;;  %1284 = vmatpush.bf16.msra.mxu1 %v2404_v21  ;;  %v2388_v44 = vor.u32 %v2813_v43, %v2387_v42  ;;  %v2849_v49 = vld [vmem:[#allocation5 + $0x264] sm:$0xf0]  ;;  %v2791_v51 = vld [vmem:[#allocation5 + $0x94] sm:$0xf0]  ;;  %v2379_v54 = vld [vmem:[#allocation5 + $0x130] sm:$0xf] }
  0x4b   : > { %1258 = vmatpush.bf16.msrb.mxu3 %v2260_v60  ;;  %1271 = vmatpush.bf16.msra.mxu0 %v2332_v5  ;;  %v2300_v53 = vor.u32 %v2791_v51, %v2299_v50  ;;  %v2811_v55 = vld [vmem:[#allocation5 + $0x134] sm:$0xf0]  ;;  %v2451_v56 = vld [vmem:[#allocation5 + $0x1c0] sm:$0xf]  ;;  %v2829_v59 = vld [vmem:[#allocation5 + $0x1c4] sm:$0xf0] }
  0x4c   : > { %2223 = vmatmul.msk.bf16.vlgmr.msrb.gmra.mxu1 %vm415_vm0, %v606_v47  ;;  %1298 = vmatpush.bf16.msra.mxu2 %v2468_v37  ;;  %v2531_v47 = vld [vmem:[#allocation5 + $0x260] sm:$0xf]  ;;  %v2380_v58 = vor.u32 %v2811_v55, %v2379_v54  ;;  %v2523_v60 = vld [vmem:[#allocation5 + $0x250] sm:$0xf]  ;;  %v2847_v61 = vld [vmem:[#allocation5 + $0x254] sm:$0xf0]  ;;  %v2452_v63 = vor.u32 %v2829_v59, %v2451_v56 }
  0x4d   : > { %v2532_v52 = vor.u32 %v2849_v49, %v2531_v47  ;;  %v2524_v0 = vor.u32 %v2847_v61, %v2523_v60  ;;  %v2291_v1 = vld [vmem:[#allocation5 + $0x80] sm:$0xf]  ;;  %v2786_v3 = vld [vmem:[#allocation5 + $0x74] sm:$0xf]  ;;  %v2285_v5 = vld [vmem:[#allocation5 + $0x78] sm:$0xf0] }
  0x4e   : > { %1285 = vmatpush.bf16.msra.mxu1 %v2396_v33  ;;  %v2288_v6 = vor.u32 %v2786_v3, %v2285_v5  ;;  %v2371_v7 = vld [vmem:[#allocation5 + $0x120] sm:$0xf]  ;;  %v2443_v9 = vld [vmem:[#allocation5 + $0x1b0] sm:$0xf]  ;;  %v2827_v11 = vld [vmem:[#allocation5 + $0x1b4] sm:$0xf0] }
  0x4f   : > { %2224 = vmatmul.msk.bf16.vlgmr.msrb.gmra.mxu2 %vm415_vm0, %v655_v48  ;;  %1259 = vmatpush.bf16.msrb.mxu3 %v2252_v2  ;;  %v2460_v48 = vor.u32 %v2831_v46, %v2459_v45  ;;  %v2789_v2 = vld [vmem:[#allocation5 + $0x84] sm:$0xf0]  ;;  %v2515_v12 = vld [vmem:[#allocation5 + $0x240] sm:$0xf]  ;;  %v2784_v16 = vld [vmem:[#allocation5 + $0x64] sm:$0xf] }
  0x50   : > { %1272 = vmatpush.bf16.msra.mxu0 %v2324_v14  ;;  %v2292_v4 = vor.u32 %v2789_v2, %v2291_v1  ;;  %v2845_v13 = vld [vmem:[#allocation5 + $0x244] sm:$0xf0]  ;;  %v2444_v14 = vor.u32 %v2827_v11, %v2443_v9  ;;  %v2363_v19 = vld [vmem:[#allocation5 + $0x110] sm:$0xf]  ;;  %v2807_v20 = vld [vmem:[#allocation5 + $0x114] sm:$0xf0] }
  0x51   : > { %1299 = vmatpush.bf16.msra.mxu2 %v2460_v48  ;;  %v2516_v15 = vor.u32 %v2845_v13, %v2515_v12  ;;  %v2435_v21 = vld [vmem:[#allocation5 + $0x1a0] sm:$0xf]  ;;  %v2364_v23 = vor.u32 %v2807_v20, %v2363_v19  ;;  %v2825_v24 = vld [vmem:[#allocation5 + $0x1a4] sm:$0xf0]  ;;  %v2507_v25 = vld [vmem:[#allocation5 + $0x230] sm:$0xf] }
  0x52   : > { %1286 = vmatpush.bf16.msra.mxu1 %v2388_v44  ;;  %v2436_v27 = vor.u32 %v2825_v24, %v2435_v21  ;;  %v2269_v30 = vld [vmem:[#allocation5 + $0x58] sm:$0xf0]  ;;  %v2355_v34 = vld [vmem:[#allocation5 + $0x100] sm:$0xf]  ;;  %v2805_v35 = vld [vmem:[#allocation5 + $0x104] sm:$0xf0] }
  0x53   : > { %1260 = vmatpush.bf16.msrb.mxu3 %v2244_v8  ;;  %v2809_v8 = vld [vmem:[#allocation5 + $0x124] sm:$0xf0]  ;;  %v2427_v36 = vld [vmem:[#allocation5 + $0x190] sm:$0xf]  ;;  %v2356_v37 = vor.u32 %v2805_v35, %v2355_v34  ;;  %v2499_v39 = vld [vmem:[#allocation5 + $0x220] sm:$0xf] }
  0x54   : > { %1273 = vmatpush.bf16.msra.mxu0 %v2316_v26  ;;  %v2372_v10 = vor.u32 %v2809_v8, %v2371_v7  ;;  %v2843_v26 = vld [vmem:[#allocation5 + $0x234] sm:$0xf0]  ;;  %v2841_v40 = vld [vmem:[#allocation5 + $0x224] sm:$0xf0]  ;;  %v2802_v44 = vld [vmem:[#allocation5 + $0xf4] sm:$0xf] }
  0x55   : > { %1300 = vmatpush.bf16.msra.mxu2 %v2452_v63  ;;  %v2508_v28 = vor.u32 %v2843_v26, %v2507_v25  ;;  %v2500_v43 = vor.u32 %v2841_v40, %v2499_v39  ;;  %v2349_v45 = vld [vmem:[#allocation5 + $0xf8] sm:$0xf0]  ;;  %v2780_v46 = vld [vmem:[#allocation5 + $0x44] sm:$0xf]  ;;  %v2261_v49 = vld [vmem:[#allocation5 + $0x48] sm:$0xf0] }
  0x56   : > { %1287 = vmatpush.bf16.msra.mxu1 %v2380_v58  ;;  %v2352_v48 = vor.u32 %v2802_v44, %v2349_v45  ;;  %v2264_v51 = vor.u32 %v2780_v46, %v2261_v49  ;;  %v2491_v54 = vld [vmem:[#allocation5 + $0x210] sm:$0xf]  ;;  %v2800_v58 = vld [vmem:[#allocation5 + $0xe4] sm:$0xf]  ;;  %v2341_v59 = vld [vmem:[#allocation5 + $0xe8] sm:$0xf0] }
  0x57   : > { %1261 = vmatpush.bf16.msrb.mxu3 %v2236_v17  ;;  %v2277_v17 = vld [vmem:[#allocation5 + $0x68] sm:$0xf0]  ;;  %v2344_v61 = vor.u32 %v2800_v58, %v2341_v59  ;;  %v2413_v63 = vld [vmem:[#allocation5 + $0x178] sm:$0xf0]  ;;  %v2837_v7 = vld [vmem:[#allocation5 + $0x204] sm:$0xf0] }
  0x58   : > { %1274 = vmatpush.bf16.msra.mxu0 %v2308_v41  ;;  %v2280_v18 = vor.u32 %v2784_v16, %v2277_v17  ;;  %v2253_v3 = vld [vmem:[#allocation5 + $0x38] sm:$0xf0]  ;;  %v2816_v12 = vld [vmem:[#allocation5 + $0x164] sm:$0xf]  ;;  %v2405_v16 = vld [vmem:[#allocation5 + $0x168] sm:$0xf0] }
  0x59   : > { %1301 = vmatpush.bf16.msra.mxu2 %v2444_v14  ;;  %v2333_v11 = vld [vmem:[#allocation5 + $0xd8] sm:$0xf0]  ;;  %v2408_v17 = vor.u32 %v2816_v12, %v2405_v16  ;;  %v2245_v19 = vld [vmem:[#allocation5 + $0x28] sm:$0xf0]  ;;  %v2814_v25 = vld [vmem:[#allocation5 + $0x154] sm:$0xf] }
  0x5a   : > { %1288 = vmatpush.bf16.msra.mxu1 %v2372_v10  ;;  %v2798_v10 = vld [vmem:[#allocation5 + $0xd4] sm:$0xf]  ;;  %v2325_v24 = vld [vmem:[#allocation5 + $0xc8] sm:$0xf0]  ;;  %v2317_v39 = vld [vmem:[#allocation5 + $0xb8] sm:$0xf0] }
  0x5b   : > { %1262 = vmatpush.bf16.msrb.mxu3 %v2228_v29  ;;  %v2782_v29 = vld [vmem:[#allocation5 + $0x54] sm:$0xf]  ;;  %v2812_v40 = vld [vmem:[#allocation5 + $0x144] sm:$0xf]  ;;  %v2389_v44 = vld [vmem:[#allocation5 + $0x148] sm:$0xf0] }
  0x5c   : > { %1275 = vmatpush.bf16.msra.mxu0 %v2300_v53  ;;  %v2272_v33 = vor.u32 %v2782_v29, %v2269_v30  ;;  %v2821_v53 = vld [vmem:[#allocation5 + $0x184] sm:$0xf0]  ;;  %v2392_v46 = vor.u32 %v2812_v40, %v2389_v44  ;;  %vm693_vm7 = vcmask 1044484   ;;  %v2365_v12 = vld [vmem:[#allocation5 + $0x118] sm:$0xf0] }
  0x5d   : > { %1302 = vmatpush.bf16.msra.mxu2 %v2436_v27  ;;  %vm3321_vm8 = vmor %vm692_vm6, %vm693_vm7 }
  0x5e   : > { %1289 = vmatpush.bf16.msra.mxu1 %v2364_v23  ;;  %v2796_v23 = vld [vmem:[#allocation5 + $0xc4] sm:$0xf] }
  0x5f   : > { %1311 = vmatpush.bf16.msra.mxu3 %v2540_v38  ;;  %v2823_v38 = vld [vmem:[#allocation5 + $0x194] sm:$0xf0]  ;;  %v2328_v27 = vor.u32 %v2796_v23, %v2325_v24  ;;  %v2477_v23 = vld [vmem:[#allocation5 + $0x1f8] sm:$0xf0] }
  0x60   : > { %1276 = vmatpush.bf16.msra.mxu0 %v2292_v4  ;;  %v2428_v42 = vor.u32 %v2823_v38, %v2427_v36  ;;  %v2794_v38 = vld [vmem:[#allocation5 + $0xb4] sm:$0xf] }
  0x62   : > { %1290 = vmatpush.bf16.msra.mxu1 %v2356_v37  ;;  %1303 = vmatpush.bf16.msra.mxu2 %v2428_v42 }
  0x63   : > { %1312 = vmatpush.bf16.msra.mxu3 %v2532_v52  ;;  %v2419_v52 = vld [vmem:[#allocation5 + $0x180] sm:$0xf] }
  0x64   : > { %1325 = vmatpush.bf16.msrb.mxu0 %v2288_v6  ;;  %v2420_v56 = vor.u32 %v2821_v53, %v2419_v52  ;;  %v2483_v6 = vld [vmem:[#allocation5 + $0x200] sm:$0xf]  ;;  %v2309_v52 = vld [vmem:[#allocation5 + $0xa8] sm:$0xf0]  ;;  %v2810_v53 = vld [vmem:[#allocation5 + $0x134] sm:$0xf] }
  0x65   : > { %v2484_v9 = vor.u32 %v2837_v7, %v2483_v6  ;;  %v2788_v7 = vld [vmem:[#allocation5 + $0x84] sm:$0xf] }
  0x66   : > { %1339 = vmatpush.bf16.msrb.mxu1 %v2352_v48  ;;  %1304 = vmatpush.bf16.msra.mxu2 %v2420_v56  ;;  %v2229_v48 = vld [vmem:[#allocation5 + $0x8] sm:$0xf0] }
  0x67   : > { %1313 = vmatpush.bf16.msra.mxu3 %v2524_v0  ;;  %v2778_v0 = vld [vmem:[#allocation5 + $0x34] sm:$0xf] }
  0x68   : > { %1326 = vmatpush.bf16.msrb.mxu0 %v2280_v18  ;;  %v2256_v5 = vor.u32 %v2778_v0, %v2253_v3  ;;  %v2776_v18 = vld [vmem:[#allocation5 + $0x24] sm:$0xf]  ;;  %v2301_v0 = vld [vmem:[#allocation5 + $0x98] sm:$0xf0] }
  0x69   : > { %v2248_v21 = vor.u32 %v2776_v18, %v2245_v19  ;;  %v2804_v18 = vld [vmem:[#allocation5 + $0x104] sm:$0xf]  ;;  %v2357_v19 = vld [vmem:[#allocation5 + $0x108] sm:$0xf0] }
  0x6a   : > { %1340 = vmatpush.bf16.msrb.mxu1 %v2344_v61 }
  0x6b   : > { %1314 = vmatpush.bf16.msra.mxu3 %v2516_v15  ;;  %v2336_v15 = vor.u32 %v2798_v10, %v2333_v11 }
  0x6c   : > { %1327 = vmatpush.bf16.msrb.mxu0 %v2272_v33 }
  0x6e   : > { %1341 = vmatpush.bf16.msrb.mxu1 %v2336_v15 }
  0x6f   : > { %1315 = vmatpush.bf16.msra.mxu3 %v2508_v28  ;;  %v2397_v28 = vld [vmem:[#allocation5 + $0x158] sm:$0xf0] }
  0x70   : > { %1328 = vmatpush.bf16.msrb.mxu0 %v2264_v51  ;;  %v2400_v30 = vor.u32 %v2814_v25, %v2397_v28  ;;  %v2792_v51 = vld [vmem:[#allocation5 + $0xa4] sm:$0xf]  ;;  %v2830_v28 = vld [vmem:[#allocation5 + $0x1d4] sm:$0xf] }
  0x71   : > { %v2312_v56 = vor.u32 %v2792_v51, %v2309_v52  ;;  %v2832_v25 = vld [vmem:[#allocation5 + $0x1e4] sm:$0xf] }
  0x72   : > { %1342 = vmatpush.bf16.msrb.mxu1 %v2328_v27 }
  0x73   : > { %1316 = vmatpush.bf16.msra.mxu3 %v2500_v43  ;;  %v2320_v43 = vor.u32 %v2794_v38, %v2317_v39 }
  0x74   : > { %1329 = vmatpush.bf16.msrb.mxu0 %v2256_v5 }
  0x76   : > { %1343 = vmatpush.bf16.msrb.mxu1 %v2320_v43 }
  0x78   : > { %1330 = vmatpush.bf16.msrb.mxu0 %v2248_v21  ;;  %v2834_v21 = vld [vmem:[#allocation5 + $0x1f4] sm:$0xf] }
  0x79   : > { %v2480_v24 = vor.u32 %v2834_v21, %v2477_v23  ;;  %v2844_v23 = vld [vmem:[#allocation5 + $0x244] sm:$0xf] }
  0x7a   : > { %1344 = vmatpush.bf16.msrb.mxu1 %v2312_v56 }
  0xb7   : > { %v432_v57 = vpop.f32.mrf.mxu0 }
  0xb9   : > { %v468_v62 = vpop.f32.mrf.mxu1 }
  0xba   : > { %v469_v41 = vadd.f32 %v468_v62, %v432_v57  ;;  %v2839_v57 = vld [vmem:[#allocation5 + $0x214] sm:$0xf0]  ;;  %v2818_v62 = vld [vmem:[#allocation5 + $0x174] sm:$0xf] }
  0xbb   : > { %v2492_v60 = vor.u32 %v2839_v57, %v2491_v54  ;;  %v2416_v2 = vor.u32 %v2818_v62, %v2413_v63  ;;  %v2381_v57 = vld [vmem:[#allocation5 + $0x138] sm:$0xf0]  ;;  %v2790_v63 = vld [vmem:[#allocation5 + $0x94] sm:$0xf] }
  0xbc   : > { %v2384_v59 = vor.u32 %v2810_v53, %v2381_v57  ;;  %v2304_v3 = vor.u32 %v2790_v63, %v2301_v0 }
  0xbd   : > { %1317 = vmatpush.bf16.msra.mxu3 %v2492_v60  ;;  %1353 = vmatpush.bf16.msrb.mxu2 %v2416_v2 }
  0xbe   : > { %1345 = vmatpush.bf16.msrb.mxu1 %v2304_v3  ;;  %v2848_v3 = vld [vmem:[#allocation5 + $0x264] sm:$0xf] }
  0xbf   : > { %v3315_v22 = vpop.f32.mrf.mxu0 }
  0xc0   : > { %v546_v47 = vpop.f32.mrf.mxu3 }
  0xc1   : > { %v470_v31 = vpop.f32.mrf.mxu1  ;;  %1318 = vmatpush.bf16.msra.mxu3 %v2484_v9  ;;  %1354 = vmatpush.bf16.msrb.mxu2 %v2408_v17  ;;  %v2806_v9 = vld [vmem:[#allocation5 + $0x114] sm:$0xf] }
  0xc2   : > { %v511_v32 = vpop.f32.mrf.mxu2  ;;  %v471_v13 = vadd.f32 %v470_v31, %v3315_v22  ;;  %v2981_v22 = vld [vmem:[%s3435_s2] ss:$0 sm:$0xff]  ;;  %v2774_v31 = vld [vmem:[#allocation5 + $0x14] sm:$0xf]  ;;  %v2368_v15 = vor.u32 %v2806_v9, %v2365_v12  ;;  %v2445_v9 = vld [vmem:[#allocation5 + $0x1b8] sm:$0xf0] }
  0xc3   : > { %v516_v50 = vadd.f32 %v511_v32, %v469_v41  ;;  %v2237_v32 = vld [vmem:[#allocation5 + $0x18] sm:$0xf0] }
  0xc4   : > { %v2240_v35 = vor.u32 %v2774_v31, %v2237_v32  ;;  %v2541_v31 = vld [vmem:[#allocation5 + $0x278] sm:$0xf0] }
  0xc5   : > { %v551_v4 = vadd.f32 %v546_v47, %v516_v50  ;;  %1355 = vmatpush.bf16.msrb.mxu2 %v2400_v30  ;;  %v2772_v47 = vld [vmem:[#allocation5 + $0x4] sm:$0xf] }
  0xc6   : > { %1331 = vmatpush.bf16.msrb.mxu0 %v2240_v35  ;;  %v2232_v50 = vor.u32 %v2772_v47, %v2229_v48 }
  0xc7   : > { %v591_v55 = vpop.f32.mrf.mxu0 }
  0xc8   : > { %v596_v14 = vadd.f32 %v591_v55, %v551_v4  ;;  %v548_v26 = vpop.f32.mrf.mxu3  ;;  %v2373_v4 = vld [vmem:[#allocation5 + $0x128] sm:$0xf0] }
  0xc9   : > { %v626_v8 = vpop.f32.mrf.mxu1  ;;  %1356 = vmatpush.bf16.msrb.mxu2 %v2392_v46 }
  0xca   : > { %v513_v1 = vpop.f32.mrf.mxu2  ;;  %v631_v29 = vadd.f32 %v626_v8, %v596_v14  ;;  %1332 = vmatpush.bf16.msrb.mxu0 %v2232_v50  ;;  %v2293_v8 = vld [vmem:[#allocation5 + $0x88] sm:$0xf0] }
  0xcb   : > { %v517_v20 = vadd.f32 %v513_v1, %v471_v13  ;;  %v2808_v1 = vld [vmem:[#allocation5 + $0x124] sm:$0xf]  ;;  %v2296_v11 = vor.u32 %v2788_v7, %v2293_v8  ;;  %v2826_v8 = vld [vmem:[#allocation5 + $0x1b4] sm:$0xf] }
  0xcc   : > { %v2376_v5 = vor.u32 %v2808_v1, %v2373_v4  ;;  %v2533_v4 = vld [vmem:[#allocation5 + $0x268] sm:$0xf0] }
  0xcd   : > { %v552_v36 = vadd.f32 %v548_v26, %v517_v20  ;;  %1357 = vmatpush.bf16.msrb.mxu2 %v2384_v59  ;;  %1346 = vmatpush.bf16.msrb.mxu1 %v2296_v11  ;;  %v2360_v20 = vor.u32 %v2804_v18, %v2357_v19  ;;  %v2469_v26 = vld [vmem:[#allocation5 + $0x1e8] sm:$0xf0]  ;;  %v2828_v59 = vld [vmem:[#allocation5 + $0x1c4] sm:$0xf]  ;;  %v2536_v12 = vor.u32 %v2848_v3, %v2533_v4 }
  0xce   : > { %v2472_v38 = vor.u32 %v2832_v25, %v2469_v26  ;;  %v2824_v18 = vld [vmem:[#allocation5 + $0x1a4] sm:$0xf]  ;;  %v2437_v19 = vld [vmem:[#allocation5 + $0x1a8] sm:$0xf0]  ;;  %v2822_v26 = vld [vmem:[#allocation5 + $0x194] sm:$0xf] }
  0xcf   : > { %v593_v33 = vpop.f32.mrf.mxu0  ;;  %v2440_v25 = vor.u32 %v2824_v18, %v2437_v19  ;;  %v2899_v18 = vld [vmem:[#allocation8 + $0x178] sm:$0xff] }
  0xd0   : > { %v597_v41 = vadd.f32 %v593_v33, %v552_v36 }
  0xd1   : > { %v628_v45 = vpop.f32.mrf.mxu1  ;;  %1358 = vmatpush.bf16.msrb.mxu2 %v2376_v5 }
  0xd2   : > { %v671_v34 = vpop.f32.mrf.mxu2  ;;  %v632_v54 = vadd.f32 %v628_v45, %v597_v41 }
  0xd3   : > { %v676_v37 = vadd.f32 %v671_v34, %v631_v29  ;;  %v2461_v29 = vld [vmem:[#allocation5 + $0x1d8] sm:$0xf0] }
  0xd5   : > { %v682_v42 = vadd.f32 %v2981_v22, %v676_v37  ;;  %1359 = vmatpush.bf16.msrb.mxu2 %v2368_v15  ;;  %v2846_v15 = vld [vmem:[#allocation5 + $0x254] sm:$0xf] }
  0xd7   : > { %v684_v49 = vmax.f32 %v682_v42, 0.0  ;;  %v2464_v42 = vor.u32 %v2830_v28, %v2461_v29  ;;  %v2842_v29 = vld [vmem:[#allocation5 + $0x234] sm:$0xf] }
  0xd9   : > { %v688_v55 = vpack.c.bf16 %v684_v49, %v684_v49  ;;  %1360 = vmatpush.bf16.msrb.mxu2 %v2360_v20 }
  0xda   : > { %v673_v58 = vpop.f32.mrf.mxu2 }
  0xdb   : > { %v695_v60 = vrot.slane %v688_v55, 7  ;;  %v677_v61 = vadd.f32 %v673_v58, %v632_v54 }
  0xdd   : > { %703 = vst [vmem:[#allocation3] sm:$0xe] %v695_v60  ;;  %v683_v62 = vadd.f32 %v2981_v22, %v677_v61  ;;  %v696_v13 = vrot.slane %v695_v60, 4  ;;  %v2850_v22 = vld [vmem:[#allocation5 + $0x274] sm:$0xf] }
  0xde   : > { %v2544_v45 = vor.u32 %v2850_v22, %v2541_v31  ;;  %v2453_v60 = vld [vmem:[#allocation5 + $0x1c8] sm:$0xf0]  ;;  %v2509_v22 = vld [vmem:[#allocation5 + $0x238] sm:$0xf0] }
  0xdf   : > { %v685_v2 = vmax.f32 %v683_v62, 0.0  ;;  %v2456_v7 = vor.u32 %v2828_v59, %v2453_v60  ;;  %v2863_v59 = vld [vmem:[#allocation8 + $0x58] sm:$0xff] }
  0xe1   : > { %v689_v6 = vpack.c.bf16 %v685_v2, %v685_v2 }
  0xe3   : > { %v697_v14 = vrot.slane %v689_v6, 7 }
  0xe4   : > { %v709_v27 = vld [vmem:[#allocation3] sm:$0xe] }
  0xe5   : > { %v698_v16 = vsel %vm3321_vm8, %v696_v13, %v697_v14  ;;  %v699_v17 = vrot.slane %v697_v14, 4  ;;  %v711_v32 = vld [vmem:[#allocation3] sm:$0xc]  ;;  %v735_v35 = vunpack.c.l.b16 %v709_v27 }
  0xe6   : > { %704 = vst [vmem:[#allocation3 + $0x4] sm:$0xf] %v698_v16  ;;  %v763_v47 = vunpack.c.l.b16 %v711_v32  ;;  %v2525_v16 = vld [vmem:[#allocation5 + $0x258] sm:$0xf0]  ;;  %v2820_v32 = vld [vmem:[#allocation5 + $0x184] sm:$0xf] }
  0xe7   : > { %705 = vst [vmem:[#allocation3 + $0x8] sm:$0x1] %v699_v17  ;;  %v2448_v17 = vor.u32 %v2826_v8, %v2445_v9  ;;  %v2528_v21 = vor.u32 %v2846_v15, %v2525_v16  ;;  %v2429_v27 = vld [vmem:[#allocation5 + $0x198] sm:$0xf0]  ;;  %v2882_v9 = vld [vmem:[#allocation8 + $0xf0] sm:$0xff]  ;;  %v2881_v16 = vld [vmem:[#allocation8 + $0xe8] sm:$0xff] }
  0xe8   : > { %v2432_v31 = vor.u32 %v2822_v26, %v2429_v27 }
  0xed   : > { %v3327_v30 = vld [vmem:[#allocation3] sm:$0xff]  }
  0xee   : > { %v2915_v33 = vunpack.c.h.b16 %v3327_v30  ;;  %1263 = vmatmul.bf16.vlgmr.msrb.gmra.mxu3 %v3327_v30  ;;  %v708_v34 = vld [vmem:[#allocation3 + $0x8] sm:$0x1]  ;;  %v724_v36 = vshll.u32 %v3327_v30, 16  ;;  %v722_v49 = vshrl.u32 %v3327_v30, 16 }
  0xef   : > { %v710_v37 = vld [vmem:[#allocation3 + $0x8] sm:$0x3]  ;;  %1367 = vmatpush.bf16.msrb.mxu3 %v2480_v24  ;;  %v719_v39 = vunpack.c.l.b16 %v708_v34  ;;  %v2517_v24 = vld [vmem:[#allocation5 + $0x248] sm:$0xf0]  ;;  %v2512_v34 = vor.u32 %v2842_v29, %v2509_v22  ;;  %v2898_v29 = vld [vmem:[#allocation8 + $0x170] sm:$0xff] }
  0xf0   : > { %v742_v40 = vunpack.c.l.b16 %v710_v37  ;;  %v736_v41 = vpack.c.b16 %v2915_v33, %v735_v35  ;;  %v726_v43 = vrot.slane %v724_v36, 1  ;;  %v764_v61 = vpack.c.b16 %v2915_v33, %v763_v47  ;;  %v2421_v33 = vld [vmem:[#allocation5 + $0x188] sm:$0xf0]  ;;  %v2840_v35 = vld [vmem:[#allocation5 + $0x224] sm:$0xf]  ;;  %v2858_v47 = vld [vmem:[#allocation8 + $0x30] sm:$0xff] }
  0xf1   : > { %v720_v44 = vpack.c.b16 %v719_v39, %v719_v39  ;;  %v2520_v28 = vor.u32 %v2844_v23, %v2517_v24  ;;  %v2501_v36 = vld [vmem:[#allocation5 + $0x228] sm:$0xf0]  ;;  %v2424_v37 = vor.u32 %v2820_v32, %v2421_v33  ;;  %v2838_v39 = vld [vmem:[#allocation5 + $0x214] sm:$0xf]  ;;  %v2872_v24 = vld [vmem:[#allocation8 + $0xa0] sm:$0xff] }
  0xf2   : > { %v743_v46 = vpack.c.b16 %v742_v40, %v742_v40  ;;  %v737_v48 = vrot.slane %v736_v41, 1  ;;  %v745_v50 = vshrl.u32 %v736_v41, 16  ;;  %v748_v51 = vshll.u32 %v736_v41, 16  ;;  %v2493_v40 = vld [vmem:[#allocation5 + $0x218] sm:$0xf0] }
  0xf3   : > { %1368 = vmatpush.bf16.msrb.mxu3 %v2472_v38  ;;  %v738_v52 = vrot.slane %v720_v44, 1  ;;  %v729_v53 = vshll.u32 %v720_v44, 16  ;;  %v727_v56 = vor.u32 %v726_v43, %v722_v49  ;;  %v765_v13 = vrot.slane %v764_v61, 2  ;;  %v2485_v43 = vld [vmem:[#allocation5 + $0x208] sm:$0xf0]  ;;  %v2854_v61 = vld [vmem:[#allocation8 + $0x10] sm:$0xff] }
  0xf4   : > { %v753_v54 = vshrl.u32 %v743_v46, 16  ;;  %v756_v55 = vshll.u32 %v743_v46, 16  ;;  %v747_v57 = vrot.slane %v745_v50, 1  ;;  %v750_v58 = vrot.slane %v748_v51, 2  ;;  %v2857_v50 = vld [vmem:[#allocation8 + $0x28] sm:$0xff]  ;;  %v2871_v32 = vld [vmem:[#allocation8 + $0x98] sm:$0xff] }
  0xf5   : > { %v739_v62 = vsel %vm407_vm14, %v737_v48, %v738_v52  ;;  %v731_v63 = vrot.slane %v729_v53, 1  ;;  %v766_v14 = vrot.slane %v743_v46, 2  ;;  %v2504_v38 = vor.u32 %v2840_v35, %v2501_v36  ;;  %v2867_v46 = vld [vmem:[#allocation8 + $0x78] sm:$0xff]  ;;  %v2866_v48 = vld [vmem:[#allocation8 + $0x70] sm:$0xff]  ;;  %v2865_v51 = vld [vmem:[#allocation8 + $0x68] sm:$0xff] }
  0xf6   : > { %v755_v0 = vrot.slane %v753_v54, 1  ;;  %v758_v1 = vrot.slane %v756_v55, 2  ;;  %1291 = vmatmul.bf16.vlgmr.msra.gmra.mxu1 %v739_v62  ;;  %v751_v2 = vor.u32 %v750_v58, %v747_v57  ;;  %v2496_v41 = vor.u32 %v2838_v39, %v2493_v40  ;;  %v2856_v54 = vld [vmem:[#allocation8 + $0x20] sm:$0xff]  ;;  %v2855_v58 = vld [vmem:[#allocation8 + $0x18] sm:$0xff]  ;;  %v2889_v36 = vld [vmem:[#allocation8 + $0x128] sm:$0xff] }
  0xf7   : > { %1369 = vmatpush.bf16.msrb.mxu3 %v2464_v42  ;;  %v732_v5 = vsel %vm440_vm1, %v727_v56, %v731_v63  ;;  %v767_v20 = vsel %vm523_vm2, %v765_v13, %v766_v14  ;;  %v2836_v42 = vld [vmem:[#allocation5 + $0x204] sm:$0xf]  ;;  %v2875_v63 = vld [vmem:[#allocation8 + $0xb8] sm:$0xff]  ;;  %v2873_v14 = vld [vmem:[#allocation8 + $0xa8] sm:$0xff] }
  0xf8   : > { %v759_v6 = vor.u32 %v758_v1, %v755_v0  ;;  %1277 = vmatmul.bf16.vlgmr.msra.gmra.mxu0 %v732_v5  ;;  %v2488_v44 = vor.u32 %v2836_v42, %v2485_v43  ;;  %v2864_v55 = vld [vmem:[#allocation8 + $0x60] sm:$0xff]  ;;  %v2883_v1 = vld [vmem:[#allocation8 + $0xf8] sm:$0xff] }
  0xf9   : > { %1381 = vmatpush.bf16.msra.mxu0 %v2544_v45  ;;  %v2859_v45 = vld [vmem:[#allocation8 + $0x38] sm:$0xff]  ;;  %v2860_v13 = vld [vmem:[#allocation8 + $0x40] sm:$0xff] }
  0xfa   : > { %v760_v11 = vsel %vm478_vm4, %v751_v2, %v759_v6  ;;  %1944 = vmatpush.bf16.msra.mxu1 %v2859_v45  ;;  %v849_v2 = vld [vmem:[%s3437_s4] sm:$0x3]  ;;  %v2861_v6 = vld [vmem:[#allocation8 + $0x48] sm:$0xff]  ;;  %v2879_v33 = vld [vmem:[#allocation8 + $0xd8] sm:$0xff] }
  0xfb   : > { %1305 = vmatmul.bf16.vlgmr.msra.gmra.mxu2 %v760_v11  ;;  %1370 = vmatpush.bf16.msrb.mxu3 %v2456_v7  ;;  %v2874_v7 = vld [vmem:[#allocation8 + $0xb0] sm:$0xff]  ;;  %v851_v8 = vperm.slane %v849_v2, 0 }
  0xfc   : > { %1958 = vmatpush.bf16.msra.mxu2 %v2867_v46  ;;  %v2878_v45 = vld [vmem:[#allocation8 + $0xd0] sm:$0xff] }
  0xfd   : > { %1382 = vmatpush.bf16.msra.mxu0 %v2536_v12  ;;  %v2852_v12 = vld [vmem:[#allocation8] sm:$0xff] }
  0xfe   : > { %1319 = vmatmul.bf16.vlgmr.msra.gmra.mxu3 %v767_v20  ;;  %1945 = vmatpush.bf16.msra.mxu1 %v2858_v47  ;;  %v2896_v47 = vld [vmem:[#allocation8 + $0x160] sm:$0xff] }
  0xff   : > { %1371 = vmatpush.bf16.msrb.mxu3 %v2448_v17  ;;  %v2891_v17 = vld [vmem:[#allocation8 + $0x138] sm:$0xff] }
 0x100   : > { %1959 = vmatpush.bf16.msra.mxu2 %v2866_v48 }
 0x101   : > { %1383 = vmatpush.bf16.msra.mxu0 %v2528_v21 }
 0x102   : > { %1946 = vmatpush.bf16.msra.mxu1 %v2857_v50 }
 0x103   : > { %1372 = vmatpush.bf16.msrb.mxu3 %v2440_v25  ;;  %v2880_v25 = vld [vmem:[#allocation8 + $0xe0] sm:$0xff] }
 0x104   : > { %1960 = vmatpush.bf16.msra.mxu2 %v2865_v51 }
 0x105   : > { %1384 = vmatpush.bf16.msra.mxu0 %v2520_v28  ;;  %v2890_v28 = vld [vmem:[#allocation8 + $0x130] sm:$0xff] }
 0x106   : > { %1347 = vmatmul.bf16.vlgmr.msrb.gmra.mxu1 %v732_v5  ;;  %v2853_v5 = vld [vmem:[#allocation8 + $0x8] sm:$0xff] }
 0x107   : > { %1373 = vmatpush.bf16.msrb.mxu3 %v2432_v31  ;;  %1947 = vmatpush.bf16.msra.mxu1 %v2856_v54 }
 0x108   : > { %1333 = vmatmul.bf16.vlgmr.msrb.gmra.mxu0 %v3327_v30  ;;  %1961 = vmatpush.bf16.msra.mxu2 %v2864_v55 }
 0x109   : > { %1385 = vmatpush.bf16.msra.mxu0 %v2512_v34 }
 0x10b   : > { %1361 = vmatmul.bf16.vlgmr.msrb.gmra.mxu2 %v739_v62  ;;  %1374 = vmatpush.bf16.msrb.mxu3 %v2424_v37  ;;  %v2862_v62 = vld [vmem:[#allocation8 + $0x50] sm:$0xff]  ;;  %v2897_v37 = vld [vmem:[#allocation8 + $0x168] sm:$0xff] }
 0x10c   : > { %1948 = vmatpush.bf16.msra.mxu1 %v2855_v58  ;;  %1962 = vmatpush.bf16.msra.mxu2 %v2863_v59  ;;  %v2887_v58 = vld [vmem:[#allocation8 + $0x118] sm:$0xff] }
 0x10d   : > { %1386 = vmatpush.bf16.msra.mxu0 %v2504_v38 }
 0x10e   : > { %1375 = vmatmul.bf16.vlgmr.msrb.gmra.mxu3 %v760_v11  ;;  %v852_v11 = vperm.slane %v849_v2, 1 }
 0x10f   : > { %1972 = vmatpush.bf16.msra.mxu3 %v2875_v63 }
 0x110   : > { %1949 = vmatpush.bf16.msra.mxu1 %v2854_v61  ;;  %1963 = vmatpush.bf16.msra.mxu2 %v2862_v62  ;;  %v2895_v62 = vld [vmem:[#allocation8 + $0x158] sm:$0xff] }
 0x111   : > { %1387 = vmatpush.bf16.msra.mxu0 %v2496_v41 }
 0x113   : > { %1973 = vmatpush.bf16.msra.mxu3 %v2874_v7  ;;  %v2894_v7 = vld [vmem:[#allocation8 + $0x150] sm:$0xff] }
 0x114   : > { %1950 = vmatpush.bf16.msra.mxu1 %v2853_v5  ;;  %1964 = vmatpush.bf16.msra.mxu2 %v2861_v6  ;;  %v2886_v6 = vld [vmem:[#allocation8 + $0x110] sm:$0xff] }
 0x115   : > { %1388 = vmatpush.bf16.msra.mxu0 %v2488_v44  ;;  %v2870_v44 = vld [vmem:[#allocation8 + $0x90] sm:$0xff] }
 0x117   : > { %1974 = vmatpush.bf16.msra.mxu3 %v2873_v14 }
 0x118   : > { %1389 = vmatmul.bf16.vlgmr.msra.gmra.mxu0 %v767_v20  ;;  %1951 = vmatpush.bf16.msra.mxu1 %v2852_v12  ;;  %v2893_v12 = vld [vmem:[#allocation8 + $0x148] sm:$0xff] }
 0x119   : > { %1986 = vmatpush.bf16.msrb.mxu0 %v2883_v1  ;;  %1965 = vmatpush.bf16.msra.mxu2 %v2860_v13 }
 0x11b   : > { %1975 = vmatpush.bf16.msra.mxu3 %v2872_v24  ;;  %v2892_v24 = vld [vmem:[#allocation8 + $0x140] sm:$0xff] }
 0x11c   : > { %2000 = vmatpush.bf16.msrb.mxu1 %v2891_v17 }
 0x11d   : > { %1987 = vmatpush.bf16.msrb.mxu0 %v2882_v9  ;;  %2014 = vmatpush.bf16.msrb.mxu2 %v2899_v18  ;;  %v2884_v18 = vld [vmem:[#allocation8 + $0x100] sm:$0xff] }
 0x11f   : > { %1976 = vmatpush.bf16.msra.mxu3 %v2871_v32 }
 0x120   : > { %2001 = vmatpush.bf16.msrb.mxu1 %v2890_v28 }
 0x121   : > { %1988 = vmatpush.bf16.msrb.mxu0 %v2881_v16  ;;  %2015 = vmatpush.bf16.msrb.mxu2 %v2898_v29 }
 0x123   : > { %1977 = vmatpush.bf16.msra.mxu3 %v2870_v44 }
 0x124   : > { %2002 = vmatpush.bf16.msrb.mxu1 %v2889_v36 }
 0x125   : > { %1989 = vmatpush.bf16.msrb.mxu0 %v2880_v25  ;;  %2016 = vmatpush.bf16.msrb.mxu2 %v2897_v37 }
 0x129   : > { %1990 = vmatpush.bf16.msrb.mxu0 %v2879_v33  ;;  %2017 = vmatpush.bf16.msrb.mxu2 %v2896_v47 }
 0x12d   : > { %1991 = vmatpush.bf16.msrb.mxu0 %v2878_v45  ;;  %2018 = vmatpush.bf16.msrb.mxu2 %v2895_v62 }
 0x131   : > { %2019 = vmatpush.bf16.msrb.mxu2 %v2894_v7 }
 0x135   : > { %2020 = vmatpush.bf16.msrb.mxu2 %v2893_v12 }
 0x139   : > { %2021 = vmatpush.bf16.msrb.mxu2 %v2892_v24 }
 0x171   : > { %v1264_v30 = vpop.f32.mrf.mxu3 }
 0x172   : > { %v1265_v19 = vadd.f32 %v1264_v30, %v851_v8  ;;  %v2888_v30 = vld [vmem:[#allocation8 + $0x120] sm:$0xff] }
 0x173   : > { %v1292_v52 = vpop.f32.mrf.mxu1  ;;  %2003 = vmatpush.bf16.msrb.mxu1 %v2888_v30 }
 0x175   : > { %v1278_v49 = vpop.f32.mrf.mxu0 }
 0x176   : > { %v1279_v20 = vadd.f32 %v1278_v49, %v1265_v19 }
 0x177   : > { %2004 = vmatpush.bf16.msrb.mxu1 %v2887_v58 }
 0x178   : > { %v1293_v22 = vadd.f32 %v1292_v52, %v1279_v20 }
 0x179   : > { %v3338_v53 = vpop.f32.mrf.mxu3 }
 0x17a   : > { %v1267_v34 = vadd.f32 %v3338_v53, %v851_v8 }
 0x17b   : > { %v3344_v0 = vpop.f32.mrf.mxu1  ;;  %2005 = vmatpush.bf16.msrb.mxu1 %v2886_v6 }
 0x17d   : > { %v3340_v56 = vpop.f32.mrf.mxu0 }
 0x17e   : > { %v3342_v57 = vpop.f32.mrf.mxu2  ;;  %v1281_v40 = vadd.f32 %v3340_v56, %v1267_v34  ;;  %v2869_v56 = vld [vmem:[#allocation8 + $0x88] sm:$0xff] }
 0x17f   : > { %v1307_v38 = vadd.f32 %v3342_v57, %v1293_v22  ;;  %v2877_v57 = vld [vmem:[#allocation8 + $0xc8] sm:$0xff]  ;;  %1978 = vmatpush.bf16.msra.mxu3 %v2869_v56 }
 0x180   : > { %v1295_v52 = vadd.f32 %v3344_v0, %v1281_v40  ;;  %1992 = vmatpush.bf16.msrb.mxu0 %v2877_v57  ;;  %v2868_v0 = vld [vmem:[#allocation8 + $0x80] sm:$0xff] }
 0x181   : > { %v1320_v60 = vpop.f32.mrf.mxu3 }
 0x182   : > { %v1321_v41 = vadd.f32 %v1320_v60, %v1307_v38 }
 0x183   : > { %v1348_v21 = vpop.f32.mrf.mxu1  ;;  %1979 = vmatpush.bf16.msra.mxu3 %v2868_v0 }
 0x184   : > { %v1395_v51 = vmax.f32 %v1321_v41, 0.0 }
 0x185   : > { %v1334_v4 = vpop.f32.mrf.mxu0 }
 0x186   : > { %v3349_v3 = vpop.f32.mrf.mxu2  ;;  %v1335_v23 = vadd.f32 %v1334_v4, %v852_v11  ;;  %v2876_v4 = vld [vmem:[#allocation8 + $0xc0] sm:$0xff] }
 0x187   : > { %v1309_v59 = vadd.f32 %v3349_v3, %v1295_v52  ;;  %1993 = vmatpush.bf16.msrb.mxu0 %v2876_v4 }
 0x188   : > { %v1349_v31 = vadd.f32 %v1348_v21, %v1335_v23 }
 0x189   : > { %v3351_v15 = vpop.f32.mrf.mxu3 }
 0x18a   : > { %v1323_v63 = vadd.f32 %v3351_v15, %v1309_v59 }
 0x18b   : > { %v1350_v49 = vpop.f32.mrf.mxu1 }
 0x18c   : > { %v1397_v9 = vmax.f32 %v1323_v63, 0.0 }
 0x18d   : > { %v1336_v26 = vpop.f32.mrf.mxu0 }
 0x18e   : > { %v1362_v27 = vpop.f32.mrf.mxu2  ;;  %v1337_v42 = vadd.f32 %v1336_v26, %v852_v11  ;;  %v2885_v11 = vld [vmem:[#allocation8 + $0x108] sm:$0xff] }
 0x18f   : > { %v1363_v39 = vadd.f32 %v1362_v27, %v1349_v31  ;;  %2006 = vmatpush.bf16.msrb.mxu1 %v2885_v11 }
 0x190   : > { %v1351_v53 = vadd.f32 %v1350_v49, %v1337_v42 }
 0x191   : > { %v1376_v35 = vpop.f32.mrf.mxu3 }
 0x192   : > { %v1377_v43 = vadd.f32 %v1376_v35, %v1363_v39 }
 0x193   : > { %2007 = vmatpush.bf16.msrb.mxu1 %v2884_v18 }
 0x195   : > { %v1390_v46 = vpop.f32.mrf.mxu0 }
 0x196   : > { %v1391_v48 = vadd.f32 %v1390_v46, %v1377_v43  ;;  %v1364_v50 = vpop.f32.mrf.mxu2 }
 0x197   : > { %v1365_v60 = vadd.f32 %v1364_v50, %v1351_v53 }
 0x198   : > { %v1396_v54 = vmax.f32 %v1391_v48, 0.0 }
 0x199   : > { %v1378_v55 = vpop.f32.mrf.mxu3 }
 0x19a   : > { %v1409_v61 = vpack.c.bf16 %v1396_v54, %v1395_v51  ;;  %v1379_v2 = vadd.f32 %v1378_v55, %v1365_v60 }
 0x19c   : > { %v1413_v1 = vrot.slane %v1409_v61, 7 }
 0x19d   : > { %v1392_v5 = vpop.f32.mrf.mxu0 }
 0x19e   : > { %1421 = vst [vmem:[#allocation4 + $0x8] sm:$0xee] %v1413_v1  ;;  %v1393_v8 = vadd.f32 %v1392_v5, %v1379_v2  ;;  %v1414_v14 = vrot.slane %v1413_v1, 4 }
 0x1a0   : > { %v1398_v3 = vmax.f32 %v1393_v8, 0.0 }
 0x1a2   : > { %v1410_v13 = vpack.c.bf16 %v1398_v3, %v1397_v9 }
 0x1a4   : > { %v1415_v15 = vrot.slane %v1410_v13, 7 }
 0x1a5   : > { %v1424_v16 = vld [vmem:[#allocation4 + $0x8] sm:$0xff] }
 0x1a6   : > { %v1427_v17 = vld [vmem:[#allocation4 + $0x8] sm:$0xee]  ;;  %v1416_v19 = vsel %vm3321_vm8, %v1414_v14, %v1415_v15  ;;  %v1417_v20 = vrot.slane %v1415_v15, 4  ;;  %v1432_v21 = vunpack.c.l.b16 %v1424_v16  ;;  %v1433_v26 = vunpack.c.h.b16 %v1424_v16 }
 0x1a7   : > { %v1443_v23 = vunpack.c.l.b16 %v1427_v17  ;;  %v1434_v25 = vunpack.c.l.b16 %v1416_v19  ;;  %v1435_v27 = vunpack.c.h.b16 %v1416_v19  ;;  %v1444_v28 = vunpack.c.h.b16 %v1427_v17 }
 0x1a8   : > { %1423 = vst [vmem:[#allocation4] sm:$0x11] %v1417_v20 }
 0x1a9   : > { %v1438_v29 = vpack.c.b16 %v1434_v25, %v1432_v21  ;;  %v1439_v22 = vpack.c.b16 %v1435_v27, %v1433_v26  ;;  %v1445_v31 = vpack.c.b16 %v1434_v25, %v1443_v23  ;;  %v1446_v32 = vpack.c.b16 %v1435_v27, %v1444_v28 }
 0x1ab   : > { %v1589_v33 = vshll.u32 %v1438_v29, 16  ;;  %v1597_v34 = vshll.u32 %v1439_v22, 16  ;;  %v1450_v35 = vshll.u32 %v1445_v31, 16  ;;  %v1462_v36 = vshll.u32 %v1446_v32, 16 }
 0x1ac   : > { %v1587_v39 = vshrl.u32 %v1438_v29, 16  ;;  %v1595_v30 = vshrl.u32 %v1439_v22, 16  ;;  %v1448_v48 = vshrl.u32 %v1445_v31, 16  ;;  %v1460_v55 = vshrl.u32 %v1446_v32, 16 }
 0x1ad   : > { %v1591_v41 = vrot.slane %v1589_v33, 1  ;;  %v1599_v42 = vrot.slane %v1597_v34, 1  ;;  %v1452_v47 = vrot.slane %v1450_v35, 1  ;;  %v1464_v49 = vrot.slane %v1462_v36, 1 }
 0x1ae   : > { %v1480_v2 = vrot.slane %v1445_v31, 1  ;;  %v1483_v0 = vrot.slane %v1446_v32, 1 }
 0x1af   : > { %v1426_v10 = vld [vmem:[#allocation4] sm:$0x11]  ;;  %v1592_v56 = vor.u32 %v1591_v41, %v1587_v39  ;;  %v1600_v57 = vor.u32 %v1599_v42, %v1595_v30  ;;  %v1453_v62 = vor.u32 %v1452_v47, %v1448_v48  ;;  %v1465_v1 = vor.u32 %v1464_v49, %v1460_v55  ;;  %v2906_v39 = vld [vmem:[%s3440_s7 + $0x30] sm:$0xff]  ;;  %v2904_v42 = vld [vmem:[%s3440_s7 + $0x20] sm:$0xff] }
 0x1b0   : > { %v1428_v37 = vld [vmem:[#allocation4] sm:$0x33]  ;;  %v1436_v38 = vunpack.c.l.b16 %v1426_v10  ;;  %v1437_v40 = vunpack.c.h.b16 %v1426_v10  ;;  %v2982_v30 = vld [vmem:[%s3439_s6] ss:$0 sm:$0xff]  ;;  %v2901_v48 = vld [vmem:[%s3440_s7 + $0x8] sm:$0xff] }
 0x1b1   : > { %v1476_v43 = vunpack.c.l.b16 %v1428_v37  ;;  %v1477_v44 = vunpack.c.h.b16 %v1428_v37 }
 0x1b2   : > { %v1440_v45 = vpack.c.b16 %v1436_v38, %v1436_v38  ;;  %v1441_v46 = vpack.c.b16 %v1437_v40, %v1437_v40  ;;  %v2907_v38 = vld [vmem:[%s3440_s7 + $0x38] sm:$0xff]  ;;  %v2905_v40 = vld [vmem:[%s3440_s7 + $0x28] sm:$0xff] }
 0x1b3   : > { %v1478_v50 = vpack.c.b16 %v1476_v43, %v1476_v43  ;;  %v1479_v51 = vpack.c.b16 %v1477_v44, %v1477_v44  ;;  %2103 = vmatpush.bf16.msrb.mxu3 %v2907_v38  ;;  %v2903_v44 = vld [vmem:[%s3440_s7 + $0x18] sm:$0xff] }
 0x1b4   : > { %v1455_v52 = vshll.u32 %v1440_v45, 16  ;;  %v1467_v53 = vshll.u32 %v1441_v46, 16  ;;  %v1471_v54 = vshrl.u32 %v1440_v45, 16  ;;  %v1473_v63 = vshrl.u32 %v1441_v46, 16  ;;  %v2902_v46 = vld [vmem:[%s3440_s7 + $0x10] sm:$0xff] }
 0x1b5   : > { %v1481_v58 = vrot.slane %v1478_v50, 1  ;;  %v1484_v59 = vrot.slane %v1479_v51, 1 }
 0x1b6   : > { %v1457_v60 = vrot.slane %v1455_v52, 1  ;;  %v1469_v61 = vrot.slane %v1467_v53, 1  ;;  %v1610_v7 = vshll.u32 %v1471_v54, 16  ;;  %v1622_v13 = vshll.u32 %v1473_v63, 16  ;;  %v2900_v53 = vld [vmem:[%s3440_s7] sm:$0xff] }
 0x1b7   : > { %v1482_v3 = vsel %vm407_vm14, %v1480_v2, %v1481_v58  ;;  %v1485_v11 = vsel %vm407_vm14, %v1483_v0, %v1484_v59  ;;  %v1634_v22 = vshll.u32 %v1481_v58, 16  ;;  %v1646_v32 = vshll.u32 %v1484_v59, 16  ;;  %2104 = vmatpush.bf16.msrb.mxu3 %v2906_v39 }
 0x1b8   : > { %v1593_v4 = vsel %vm440_vm1, %v1592_v56, %v1457_v60  ;;  %v1601_v5 = vsel %vm440_vm1, %v1600_v57, %v1469_v61  ;;  %v1458_v6 = vsel %vm440_vm1, %v1453_v62, %v1457_v60  ;;  %v1470_v9 = vsel %vm440_vm1, %v1465_v1, %v1469_v61 }
 0x1b9   : > { %1952 = vmatmul.bf16.vlgmr.msra.gmra.mxu1 %v1593_v4  ;;  %1966 = vmatmul.bf16.vlgmr.msra.gmra.mxu2 %v1601_v5  ;;  %v1605_v8 = vshll.u32 %v1458_v6, 16  ;;  %v1617_v12 = vshll.u32 %v1470_v9, 16  ;;  %v1603_v14 = vshrl.u32 %v1458_v6, 16  ;;  %v1615_v16 = vshrl.u32 %v1470_v9, 16 }
 0x1ba   : > { %v1629_v18 = vshll.u32 %v1482_v3, 16  ;;  %v1641_v19 = vshll.u32 %v1485_v11, 16  ;;  %v1612_v21 = vrot.slane %v1610_v7, 1  ;;  %v1624_v24 = vrot.slane %v1622_v13, 1 }
 0x1bb   : > { %v1607_v15 = vrot.slane %v1605_v8, 1  ;;  %v1619_v17 = vrot.slane %v1617_v12, 1  ;;  %v1627_v29 = vshrl.u32 %v1482_v3, 16  ;;  %v1639_v31 = vshrl.u32 %v1485_v11, 16  ;;  %2105 = vmatpush.bf16.msrb.mxu3 %v2905_v40 }
 0x1bc   : > { %v1631_v27 = vrot.slane %v1629_v18, 1  ;;  %v1643_v28 = vrot.slane %v1641_v19, 1  ;;  %v1636_v35 = vrot.slane %v1634_v22, 1  ;;  %v1648_v10 = vrot.slane %v1646_v32, 1 }
 0x1bd   : > { %v1608_v20 = vor.u32 %v1607_v15, %v1603_v14  ;;  %v1620_v23 = vor.u32 %v1619_v17, %v1615_v16  ;;  %v2054_v17 = vld [vmem:[%s3441_s8] sm:$0x1] }
 0x1be   : > { %v1632_v33 = vor.u32 %v1631_v27, %v1627_v29  ;;  %v1644_v34 = vor.u32 %v1643_v28, %v1639_v31 }
 0x1bf   : > { %v1613_v25 = vsel %vm440_vm1, %v1608_v20, %v1612_v21  ;;  %v1625_v26 = vsel %vm440_vm1, %v1620_v23, %v1624_v24  ;;  %2106 = vmatpush.bf16.msrb.mxu3 %v2904_v42 }
 0x1c0   : > { %1980 = vmatmul.bf16.vlgmr.msra.gmra.mxu3 %v1613_v25  ;;  %1994 = vmatmul.bf16.vlgmr.msrb.gmra.mxu0 %v1625_v26  ;;  %v1637_v36 = vsel %vm440_vm1, %v1632_v33, %v1636_v35  ;;  %v1649_v37 = vsel %vm440_vm1, %v1644_v34, %v1648_v10 }
 0x1c3   : > { %2107 = vmatpush.bf16.msrb.mxu3 %v2903_v44 }
 0x1c7   : > { %2108 = vmatpush.bf16.msrb.mxu3 %v2902_v46 }
 0x1c9   : > { %2008 = vmatmul.bf16.vlgmr.msrb.gmra.mxu1 %v1637_v36  ;;  %2022 = vmatmul.bf16.vlgmr.msrb.gmra.mxu2 %v1649_v37 }
 0x1cb   : > { %2109 = vmatpush.bf16.msrb.mxu3 %v2901_v48 }
 0x1cf   : > { %2110 = vmatpush.bf16.msrb.mxu3 %v2900_v53 }
 0x236   : > { %v1953_v41 = vpop.f32.mrf.mxu1 }
 0x237   : > { %v1954_v51 = vadd.f32 %v2982_v30, %v1953_v41 }
 0x23c   : > { %v1967_v43 = vpop.f32.mrf.mxu2 }
 0x23d   : > { %v1995_v49 = vpop.f32.mrf.mxu0  ;;  %v1968_v54 = vadd.f32 %v1967_v43, %v1954_v51 }
 0x23e   : > { %v1955_v45 = vpop.f32.mrf.mxu1 }
 0x23f   : > { %v1956_v55 = vadd.f32 %v2982_v30, %v1955_v45 }
 0x243   : > { %v1981_v47 = vpop.f32.mrf.mxu3 }
 0x244   : > { %v1969_v50 = vpop.f32.mrf.mxu2  ;;  %v1982_v56 = vadd.f32 %v1981_v47, %v1968_v54 }
 0x245   : > { %v1970_v57 = vadd.f32 %v1969_v50, %v1956_v55  ;;  %v1997_v62 = vpop.f32.mrf.mxu0 }
 0x246   : > { %v2009_v52 = vpop.f32.mrf.mxu1  ;;  %v1996_v61 = vadd.f32 %v1995_v49, %v1982_v56 }
 0x248   : > { %v2010_v2 = vadd.f32 %v2009_v52, %v1996_v61 }
 0x24b   : > { %v1983_v58 = vpop.f32.mrf.mxu3 }
 0x24c   : > { %v1984_v59 = vadd.f32 %v1983_v58, %v1970_v57  ;;  %v2023_v60 = vpop.f32.mrf.mxu2 }
 0x24d   : > { %v2024_v0 = vadd.f32 %v2023_v60, %v2010_v2 }
 0x24e   : > { %v1998_v63 = vadd.f32 %v1997_v62, %v1984_v59  ;;  %v2011_v1 = vpop.f32.mrf.mxu1 }
 0x24f   : > { %v2028_v7 = vmax.f32 %v2024_v0, 0.0 }
 0x250   : > { %v2012_v4 = vadd.f32 %v2011_v1, %v1998_v63 }
 0x254   : > { %v2025_v5 = vpop.f32.mrf.mxu2 }
 0x255   : > { %v2026_v6 = vadd.f32 %v2025_v5, %v2012_v4 }
 0x257   : > { %v2029_v8 = vmax.f32 %v2026_v6, 0.0 }
 0x259   : > { %v2030_v9 = vadd.f32 %v2029_v8, %v2028_v7 }
 0x25b   : > { %v2031_v3 = vrot.slane %v2030_v9, 4 }
 0x25d   : > { %v2032_v11 = vadd.f32 %v2031_v3, %v2030_v9 }
 0x25f   : > { %v2033_v12 = vrot.slane %v2032_v11, 2 }
 0x261   : > { %v2034_v13 = vadd.f32 %v2033_v12, %v2032_v11 }
 0x263   : > { %v2035_v14 = vrot.slane %v2034_v13, 1 }
 0x265   : > { %v2036_v15 = vadd.f32 %v2035_v14, %v2034_v13 }
 0x267   : > { %v2037_v16 = vpack.c.bf16 %v2036_v15, %v2036_v15 }
 0x269   : > { %2111 = vmatmul.bf16.vlgmr.msrb.gmra.mxu3 %v2037_v16 }
 0x2ec   : > { %v2112_v18 = vpop.f32.mrf.mxu3 }
 0x2ed   : > { %v2113_v19 = vadd.f32 %v2112_v18, %v2054_v17 }
 0x2ef   : > { %2117 = vst.msk [vmem:[%s358_s14] sm:$0x1] %vm2116_vm9, %v2113_v19 }
 0x2f0   : > { %3070 = shalt.err (!%p3067_p8)
}
 0x2f1   : > { %2924 = dma.vmem_to_hbm [thread:$0]  (%p3210_p5), %s2130_s16, 16, %s2132_s17, %s2119_s22  }
 0x2f4   : > { %v2114_v20 = vpop.f32.mrf.mxu3 }
 0x2f5 PF: > { %p2941_p9 = scmp.ge.s32.totalorder %s3113_s12, 2  ;;  %s2143_s24 = sand.u32 1, %s3101_s30  }
 0x2f6   : > { %s2144_s28 = scalar_lea.sflag [#allocation7], %s2143_s24 }
 0x2f7   : > { %p2934_p10 = pnand %p2941_p9, %p3214_p6 }
 0x2f9   : > { %p2935_p11 = pneg %p2934_p10 }
 0x2fb   : > { %3096 = dma.done.wait (%p2935_p11), %s2144_s28, 16  }
 0x2fc   : > { %3098 = vsyncadd (%p2935_p11), %s2144_s28, 4294967280  ;;  %p21_p12 = scmp.ge.s32.totalorder %s3197_s15, 4   ;;  %s3456_s30 = smov %s3105_s10 }
 0x2fd   : > { %s3457_s10 = smov %s3109_s11  ;;  %s3458_s11 = smov %s3208_s18 }
 0x2fe   : > { %s3459_s12 = smov %s3197_s15  ;;  %23 = sbr.rel (!%p21_p12) target bundleno = 7 (0x7), region = 100 }
 0x303   :  { %2149 = vsyncpa [#allocation6], 1 }
 0x304   :  { %2151 = vsyncpa [#allocation6 + $0x1], 1 }
 0x305   :  { %2152 = vsyncpa [#allocation9], 1 }
 0x306   :  { %2153 = vsyncpa [#allocation7], 1 }
 0x307   :  { %2155 = vsyncpa [#allocation7 + $0x1], 1 }

</bundles_post_ra>
